<compile_context>
chip_gen: v7x
topology: tpu7x:2x2x1
jax: 0.10.0
libtpu: 0.0.40
codegen_flags: <defaults>
</compile_context>

<pallas_src>
import functools

import jax
import jax.numpy as jnp
from jax.experimental import pallas as pl
from jax.experimental.pallas import tpu as pltpu


def _round_up(x, m):
    return (x + m - 1) // m * m


def _fused_conv_kernel(xt_ref, w1_ref, b1_ref, w2_ref, b2_ref, o_ref, *,
                       kh_taps, cout, th, r_rows, wpf, h2):
    """One (batch, H-tile) grid step.

    xt_ref: (Cin*KW, R*Wpf)  pre-shifted conv1 tap slab, row = ci*KW + kw,
                             rows flattened with lane-aligned stride Wpf
    w1_ref: (Cmid, Cin*KW)   conv1 weights
    b1_ref: (Cmid, 1)
    w2_ref: (KH*Cout, Cmid)  conv2 weights, row = kh*Cout + co
    b2_ref: (Cout, 1)
    o_ref : (Cout, TH*Wpf)   flat lane-dense output slab (row stride Wpf)
    """
    t = pl.program_id(1)
    lc1 = r_rows * wpf          # flat width of the conv1/v3 grid
    thwf = th * wpf             # flat width of the conv2 output

    # ---- conv1: single aligned MXU matmul over pre-built taps, bias, ReLU6 ----
    acc1 = jax.lax.dot_general(
        w1_ref[...], xt_ref[...],
        dimension_numbers=(((1,), (0,)), ((), ())),
        preferred_element_type=jnp.float32)                      # (Cmid, lc1)
    v3 = jnp.clip(acc1 + b1_ref[...], 0.0, 6.0)

    # ---- conv2 stage 1: stacked matmul over all (kh, cout) at once ----
    tmp = jax.lax.dot_general(
        w2_ref[...], v3,
        dimension_numbers=(((1,), (0,)), ((), ())),
        preferred_element_type=jnp.float32)                      # (KH*Cout, lc1)

    # conv2's zero H-padding: rows whose global conv1-row index t*TH + r - 3
    # falls outside [0, H2) must contribute 0.  Masking tmp (28 rows) is
    # mathematically identical to masking v3 (64 rows): the stage-1 matmul is
    # pointwise in the flattened spatial (lane) dimension.
    pos = jax.lax.broadcasted_iota(jnp.int32, (1, lc1), 1)
    lo = jnp.maximum(0, 3 - t * th) * wpf
    hi = jnp.minimum(r_rows, h2 + 3 - t * th) * wpf
    tmp = jnp.where((pos >= lo) & (pos < hi), tmp, 0.0)

    # ---- conv2 stage 2: lane-ALIGNED shifted-row accumulation (shifts kh*Wpf
    # are multiples of 128), bias, and ONE large unmasked lane-dense store ----
    acc = tmp[0:cout, 0:thwf]
    for kh in range(1, kh_taps):
        acc = acc + tmp[kh * cout:(kh + 1) * cout,
                        kh * wpf:kh * wpf + thwf]
    o_ref[...] = acc + b2_ref[...]


def model_forward(x_nchw, w1, b1, w2, b2, *, tile_h=None):
    """Pallas equivalent of Model.forward (returns (N, 4, H+2, W+2) f32)."""
    N, Cin, H, W = x_nchw.shape
    Cmid, _, _, KW = w1.shape           # (64, 3, 1, 7)
    Cout, _, KH, _ = w2.shape           # (4, 64, 7, 1)
    H2, W2 = H + 2, W + 2
    Wpf = _round_up(W + 8, 128)         # lane-aligned flat row stride

    # H tiling: biggest TH (multiple of 8) whose live-VMEM estimate fits a
    # ~18 MiB budget (safe on v5e/v6e 128 MiB and v7x 64 MiB), while keeping
    # at least 2 grid steps along H for pipelining when possible.
    if tile_h is None:
        per_row = (2 * Cin * KW + 2 * Cmid + KH * Cout + 2 * Cout) * Wpf * 4
        th_cap = max(8, (18 * 1024 * 1024 // per_row) // 8 * 8)
        tile_h = min(th_cap, max(8, _round_up(pl.cdiv(H2, 2), 8)))
    TH = max(8, _round_up(int(tile_h), 8))
    T = pl.cdiv(H2, TH)
    R = TH + 6                          # tile rows + conv2 H halo (3 each side)
    Hgrid = T * TH                      # overhang rows are sliced off below

    x = x_nchw.astype(jnp.float32)
    # Zero pad: 4 rows top (conv2 halo 3 + conv1 H-pad 1), bottom up to the last
    # tile's halo; 4 cols left (conv2 W-pad 1 + conv1 W-pad 3), right to a total
    # width of Wpf + 6 so every kw shift stays in bounds.
    xpad = jnp.pad(x, ((0, 0), (0, 0), (4, Hgrid + 2 - H), (4, Wpf + 2 - W)))
    # Pre-shifted conv1 taps (cheap: only 3 input channels); row = ci*KW + kw.
    xtaps = jnp.stack([xpad[..., kw:kw + Wpf] for kw in range(KW)], axis=2)
    xtaps = xtaps.reshape(N, Cin * KW, Hgrid + 6, Wpf)
    # Overlapping per-tile row slabs, rows flattened with stride Wpf.
    xt = jnp.stack([xtaps[:, :, t * TH:t * TH + R, :] for t in range(T)], axis=1)
    xt = xt.reshape(N, T, Cin * KW, R * Wpf)

    w1m = w1.reshape(Cmid, Cin * KW).astype(jnp.float32)          # [cm, ci*7+kw]
    w2s = jnp.transpose(w2[:, :, :, 0], (2, 0, 1)).reshape(KH * Cout, Cmid)
    w2s = w2s.astype(jnp.float32)                                 # [kh*4+co, cm]
    b1c = b1.reshape(Cmid, 1).astype(jnp.float32)
    b2c = b2.reshape(Cout, 1).astype(jnp.float32)

    kernel = functools.partial(
        _fused_conv_kernel, kh_taps=KH, cout=Cout,
        th=TH, r_rows=R, wpf=Wpf, h2=H2)

    out = pl.pallas_call(
        kernel,
        out_shape=jax.ShapeDtypeStruct((N, T, Cout, TH * Wpf), jnp.float32),
        grid=(N, T),
        in_specs=[
            pl.BlockSpec((None, None, Cin * KW, R * Wpf),
                         lambda n, t: (n, t, 0, 0)),
            pl.BlockSpec((Cmid, Cin * KW), lambda n, t: (0, 0)),
            pl.BlockSpec((Cmid, 1), lambda n, t: (0, 0)),
            pl.BlockSpec((KH * Cout, Cmid), lambda n, t: (0, 0)),
            pl.BlockSpec((Cout, 1), lambda n, t: (0, 0)),
        ],
        out_specs=pl.BlockSpec((None, None, Cout, TH * Wpf),
                               lambda n, t: (n, t, 0, 0)),
        compiler_params=pltpu.CompilerParams(
            dimension_semantics=("parallel", "parallel"),
            vmem_limit_bytes=48 * 1024 * 1024),
    )(xt, w1m, b1c, w2s, b2c)

    # Layout plumbing on the tiny 4-channel output: un-flatten rows, drop the
    # lane padding and the last-tile overhang rows.
    out = out.reshape(N, T, Cout, TH, Wpf)
    out = jnp.transpose(out, (0, 2, 1, 3, 4)).reshape(N, Cout, Hgrid, Wpf)
    core = out[:, :, :H2, 1:W + 1]                                # (N, Cout, H2, W)
    # Output W-boundary columns read only conv2's zero W-padding -> exactly b2.
    edge = jnp.broadcast_to(b2c.reshape(1, Cout, 1, 1), (N, Cout, H2, 1))
    return jnp.concatenate([edge, core, edge], axis=-1)           # (N, Cout, H2, W2)


def reference_forward(x, w1, b1, w2, b2):
    dn = ('NCHW', 'OIHW', 'NCHW')
    v1 = jax.lax.conv_general_dilated(
        x, w1, window_strides=(1, 1), padding=((1, 1), (3, 3)),
        dimension_numbers=dn, precision=jax.lax.Precision.HIGHEST)
    v1 = v1 + b1[None, :, None, None]
    v3 = jnp.clip(v1, 0.0, 6.0)
    v4 = jax.lax.conv_general_dilated(
        v3, w2, window_strides=(1, 1), padding=((3, 3), (1, 1)),
        dimension_numbers=dn, precision=jax.lax.Precision.HIGHEST)
    return v4 + b2[None, :, None, None]


if __name__ == "__main__":
    key = jax.random.PRNGKey(0)
    kx, k1, k2, k3, k4 = jax.random.split(key, 5)

    # Small shapes consistent with the module (original was (1, 3, 64, 256)).
    N, Cin, H, W = 2, 3, 16, 32
    x = jax.random.normal(kx, (N, Cin, H, W), jnp.float32)

    # Deterministic PyTorch-default-style uniform init.
    fan1 = Cin * 1 * 7
    lim1 = 1.0 / (fan1 ** 0.5)
    w1 = jax.random.uniform(k1, (64, Cin, 1, 7), jnp.float32, -lim1, lim1)
    b1 = jax.random.uniform(k2, (64,), jnp.float32, -lim1, lim1)
    fan2 = 64 * 7 * 1
    lim2 = 1.0 / (fan2 ** 0.5)
    w2 = jax.random.uniform(k3, (4, 64, 7, 1), jnp.float32, -lim2, lim2)
    b2 = jax.random.uniform(k4, (4,), jnp.float32, -lim2, lim2)

    out = jax.jit(model_forward)(x, w1, b1, w2, b2)
    out = jax.block_until_ready(out)

    ref = reference_forward(x, w1, b1, w2, b2)
    assert out.shape == (N, 4, H + 2, W + 2), out.shape
    assert jnp.allclose(out, ref, atol=5e-2, rtol=5e-2), \
        float(jnp.max(jnp.abs(out - ref)))
    print("KERNEL_OK")
</pallas_src>

<mosaic_0001>
module attributes {stable_mosaic.version = 11 : i64} {
  func.func @_fused_conv_kernel(%arg0: i32, %arg1: i32, %arg2: memref<1x1x21x2816xf32, #tpu.memory_space<vmem>>, %arg3: memref<64x21xf32, #tpu.memory_space<vmem>>, %arg4: memref<64x1xf32, #tpu.memory_space<vmem>>, %arg5: memref<28x64xf32, #tpu.memory_space<vmem>>, %arg6: memref<4x1xf32, #tpu.memory_space<vmem>>, %arg7: memref<1x1x4x2048xf32, #tpu.memory_space<vmem>>) attributes {dimension_semantics = [#tpu.dimension_semantics<parallel>, #tpu.dimension_semantics<parallel>], iteration_bounds = array<i64: 2, 2>, scalar_prefetch = 0 : i64, scratch_operands = 0 : i64, tpu.core_type = #tpu.core_type<tc>, window_params = [{transform_indices = @transform_0, window_bounds = array<i64: 1, 1, 21, 2816>}, {pipeline_mode = #tpu.pipeline_mode<synchronous>, transform_indices = @transform_1, window_bounds = array<i64: 64, 21>}, {pipeline_mode = #tpu.pipeline_mode<synchronous>, transform_indices = @transform_2, window_bounds = array<i64: 64, 1>}, {pipeline_mode = #tpu.pipeline_mode<synchronous>, transform_indices = @transform_3, window_bounds = array<i64: 28, 64>}, {pipeline_mode = #tpu.pipeline_mode<synchronous>, transform_indices = @transform_4, window_bounds = array<i64: 4, 1>}, {transform_indices = @transform_5, window_bounds = array<i64: 1, 1, 4, 2048>}]} {
    %c0 = arith.constant 0 : index
    %c0_0 = arith.constant 0 : index
    %0 = vector.load %arg3[%c0, %c0_0] : memref<64x21xf32, #tpu.memory_space<vmem>>, vector<64x21xf32>
    %c0_1 = arith.constant 0 : index
    %c0_2 = arith.constant 0 : index
    %c0_3 = arith.constant 0 : index
    %c0_4 = arith.constant 0 : index
    %1 = vector.load %arg2[%c0_1, %c0_2, %c0_3, %c0_4] : memref<1x1x21x2816xf32, #tpu.memory_space<vmem>>, vector<1x1x21x2816xf32>
    %2 = vector.shape_cast %1 : vector<1x1x21x2816xf32> to vector<21x2816xf32>
    %cst = arith.constant dense<0.000000e+00> : vector<64x2816xf32>
    %3 = tpu.matmul %0, %2, %cst {dimension_numbers = #tpu.dot_dimension_numbers<[1], [0], [0], [1], [0, 0, 1, 1], [], []>} : vector<64x21xf32>, vector<21x2816xf32>, vector<64x2816xf32> -> vector<64x2816xf32>
    %c0_5 = arith.constant 0 : index
    %c0_6 = arith.constant 0 : index
    %4 = vector.load %arg4[%c0_5, %c0_6] : memref<64x1xf32, #tpu.memory_space<vmem>>, vector<64x1xf32>
    %5 = vector.broadcast %4 : vector<64x1xf32> to vector<64x2816xf32>
    %6 = arith.addf %3, %5 : vector<64x2816xf32>
    %cst_7 = arith.constant 0.000000e+00 : f32
    %cst_8 = arith.constant 6.000000e+00 : f32
    %7 = vector.broadcast %cst_7 : f32 to vector<64x2816xf32>
    %8 = arith.maximumf %7, %6 : vector<64x2816xf32>
    %9 = vector.broadcast %cst_8 : f32 to vector<64x2816xf32>
    %10 = arith.minimumf %9, %8 : vector<64x2816xf32>
    %c0_9 = arith.constant 0 : index
    %c0_10 = arith.constant 0 : index
    %11 = vector.load %arg5[%c0_9, %c0_10] : memref<28x64xf32, #tpu.memory_space<vmem>>, vector<28x64xf32>
    %cst_11 = arith.constant dense<0.000000e+00> : vector<28x2816xf32>
    %12 = tpu.matmul %11, %10, %cst_11 {dimension_numbers = #tpu.dot_dimension_numbers<[1], [0], [0], [1], [0, 0, 1, 1], [], []>} : vector<28x64xf32>, vector<64x2816xf32>, vector<28x2816xf32> -> vector<28x2816xf32>
    %13 = tpu.iota {dimensions = array<i32: 1>} : vector<1x2816xi32>
    %c16_i32 = arith.constant 16 : i32
    %14 = arith.muli %arg1, %c16_i32 : i32
    %c3_i32 = arith.constant 3 : i32
    %15 = arith.subi %c3_i32, %14 : i32
    %c0_i32 = arith.constant 0 : i32
    %16 = arith.maxsi %c0_i32, %15 : i32
    %c128_i32 = arith.constant 128 : i32
    %17 = arith.muli %16, %c128_i32 : i32
    %c16_i32_12 = arith.constant 16 : i32
    %18 = arith.muli %arg1, %c16_i32_12 : i32
    %c21_i32 = arith.constant 21 : i32
    %19 = arith.subi %c21_i32, %18 : i32
    %c22_i32 = arith.constant 22 : i32
    %20 = arith.minsi %c22_i32, %19 : i32
    %c128_i32_13 = arith.constant 128 : i32
    %21 = arith.muli %20, %c128_i32_13 : i32
    %22 = vector.broadcast %17 : i32 to vector<1x2816xi32>
    %23 = arith.cmpi sge, %13, %22 : vector<1x2816xi32>
    %24 = vector.broadcast %21 : i32 to vector<1x2816xi32>
    %25 = arith.cmpi slt, %13, %24 : vector<1x2816xi32>
    %26 = arith.andi %23, %25 : vector<1x2816xi1>
    %cst_14 = arith.constant 0.000000e+00 : f32
    %27 = vector.shape_cast %26 : vector<1x2816xi1> to vector<1x2816xi1>
    %28 = vector.broadcast %27 : vector<1x2816xi1> to vector<28x2816xi1>
    %29 = vector.broadcast %cst_14 : f32 to vector<28x2816xf32>
    %30 = arith.select %28, %12, %29 : vector<28x2816xi1>, vector<28x2816xf32>
    %31 = vector.extract_strided_slice %30 {offsets = [0, 0], sizes = [4, 2048], strides = [1, 1]} : vector<28x2816xf32> to vector<4x2048xf32>
    %32 = vector.extract_strided_slice %30 {offsets = [4, 128], sizes = [4, 2048], strides = [1, 1]} : vector<28x2816xf32> to vector<4x2048xf32>
    %33 = arith.addf %31, %32 : vector<4x2048xf32>
    %34 = vector.extract_strided_slice %30 {offsets = [8, 256], sizes = [4, 2048], strides = [1, 1]} : vector<28x2816xf32> to vector<4x2048xf32>
    %35 = arith.addf %33, %34 : vector<4x2048xf32>
    %36 = vector.extract_strided_slice %30 {offsets = [12, 384], sizes = [4, 2048], strides = [1, 1]} : vector<28x2816xf32> to vector<4x2048xf32>
    %37 = arith.addf %35, %36 : vector<4x2048xf32>
    %38 = vector.extract_strided_slice %30 {offsets = [16, 512], sizes = [4, 2048], strides = [1, 1]} : vector<28x2816xf32> to vector<4x2048xf32>
    %39 = arith.addf %37, %38 : vector<4x2048xf32>
    %40 = vector.extract_strided_slice %30 {offsets = [20, 640], sizes = [4, 2048], strides = [1, 1]} : vector<28x2816xf32> to vector<4x2048xf32>
    %41 = arith.addf %39, %40 : vector<4x2048xf32>
    %42 = vector.extract_strided_slice %30 {offsets = [24, 768], sizes = [4, 2048], strides = [1, 1]} : vector<28x2816xf32> to vector<4x2048xf32>
    %43 = arith.addf %41, %42 : vector<4x2048xf32>
    %c0_15 = arith.constant 0 : index
    %c0_16 = arith.constant 0 : index
    %44 = vector.load %arg6[%c0_15, %c0_16] : memref<4x1xf32, #tpu.memory_space<vmem>>, vector<4x1xf32>
    %45 = vector.broadcast %44 : vector<4x1xf32> to vector<4x2048xf32>
    %46 = arith.addf %43, %45 : vector<4x2048xf32>
    %c0_17 = arith.constant 0 : index
    %c0_18 = arith.constant 0 : index
    %c0_19 = arith.constant 0 : index
    %c0_20 = arith.constant 0 : index
    %47 = vector.load %arg7[%c0_17, %c0_18, %c0_19, %c0_20] : memref<1x1x4x2048xf32, #tpu.memory_space<vmem>>, vector<1x1x4x2048xf32>
    %48 = vector.shape_cast %47 : vector<1x1x4x2048xf32> to vector<4x2048xf32>
    %49 = vector.shape_cast %46 : vector<4x2048xf32> to vector<1x1x4x2048xf32>
    tpu.vector_store %arg7[%c0_17, %c0_18, %c0_19, %c0_20], %49 {strides = array<i32>} : memref<1x1x4x2048xf32, #tpu.memory_space<vmem>>, vector<1x1x4x2048xf32>,
    return
  }
  func.func @transform_0(%arg0: i32, %arg1: i32) -> (i32, i32, i32, i32) {
    %c0_i32 = arith.constant 0 : i32
    %c0_i32_0 = arith.constant 0 : i32
    %c0_i32_1 = arith.constant 0 : i32
    return %arg0, %arg1, %c0_i32, %c0_i32_0 : i32, i32, i32, i32
  }
  func.func @transform_1(%arg0: i32, %arg1: i32) -> (i32, i32) {
    %c0_i32 = arith.constant 0 : i32
    %c0_i32_0 = arith.constant 0 : i32
    %c0_i32_1 = arith.constant 0 : i32
    return %c0_i32, %c0_i32_0 : i32, i32
  }
  func.func @transform_2(%arg0: i32, %arg1: i32) -> (i32, i32) {
    %c0_i32 = arith.constant 0 : i32
    %c0_i32_0 = arith.constant 0 : i32
    %c0_i32_1 = arith.constant 0 : i32
    return %c0_i32, %c0_i32_0 : i32, i32
  }
  func.func @transform_3(%arg0: i32, %arg1: i32) -> (i32, i32) {
    %c0_i32 = arith.constant 0 : i32
    %c0_i32_0 = arith.constant 0 : i32
    %c0_i32_1 = arith.constant 0 : i32
    return %c0_i32, %c0_i32_0 : i32, i32
  }
  func.func @transform_4(%arg0: i32, %arg1: i32) -> (i32, i32) {
    %c0_i32 = arith.constant 0 : i32
    %c0_i32_0 = arith.constant 0 : i32
    %c0_i32_1 = arith.constant 0 : i32
    return %c0_i32, %c0_i32_0 : i32, i32
  }
  func.func @transform_5(%arg0: i32, %arg1: i32) -> (i32, i32, i32, i32) {
    %c0_i32 = arith.constant 0 : i32
    %c0_i32_0 = arith.constant 0 : i32
    %c0_i32_1 = arith.constant 0 : i32
    return %arg0, %arg1, %c0_i32, %c0_i32_0 : i32, i32, i32, i32
  }
}

</mosaic_0001>

<bundles_post_ra>
// kernel: model_forward.1
= control target key start
LH: loop header
LB: loop body
LE: loop exit
PB: predicated region body
PF: predicated region fallthrough
CT: control target
= control target key end

     0   :  { %s4167_s18 = smov 0   ;;  %s4169_s19 = smov 0   ;;  %s5376_s0 = inlined_call_operand.vmem [shape: f32[2,2,21,2816], index: 0, kind: input, shape index: {}]   ;;  %s5377_s1 = inlined_call_operand.vmem [shape: f32[64,21], index: 1, kind: input, shape index: {}]   ;;  %s5378_s2 = inlined_call_operand.vmem [shape: f32[64,1], index: 2, kind: input, shape index: {}]   ;;  %s5379_s3 = inlined_call_operand.vmem [shape: f32[28,64], index: 3, kind: input, shape index: {}]   ;;  %s5380_s4 = inlined_call_operand.vmem [shape: f32[4,1], index: 4, kind: input, shape index: {}]   ;;  %s5381_s5 = inlined_call_operand.vmem [shape: f32[2,2,4,2048], index: 5, kind: output, shape index: {}]  }
   0x1   :  { %s4171_s20 = smov 0   ;;  %s4173_s21 = smov 0  }
   0x2   :  { %s4175_s22 = smov 0  }
   0x3 LB: > { %s24_s23 = sadd.s32 1, %s4125_s20  ;;  %s27_s24 = sadd.s32 1, %s4129_s21  ;;  %s4133_s22 = sphi %s4175_s22, %s15_s22   ;;  %s4129_s21 = sphi %s4173_s21, %s5419_s21   ;;  %s4125_s20 = sphi %s4171_s20, %s5418_s20   ;;  %s4121_s19 = sphi %s4169_s19, %s5417_s19   ;;  %s4117_s18 = sphi %s4167_s18, %s5416_s18  }
   0x4   : > { %p25_p0 = scmp.ge.s32.totalorder %s24_s23, 2  ;;  %p3657_p1 = scmp.ge.s32.totalorder %s4133_s22, 1 }
   0x5   : > { %p207_p2 = scmp.lt.s32.totalorder %s4133_s22, 5 }
   0x6   : > { %s5421_s23 = smov (%p25_p0, %s24_s23), 0  ;;  %s5423_s24 = smov (!%p25_p0, %s27_s24), %s4129_s21 }
   0x7   : > { %p208_p3 = pnand %p3657_p1, %p207_p2  ;;  %p29_p4 = scmp.ge.s32.totalorder %s5423_s24, 2 }
   0x8   : > { %p243_p5 = scmp.lt.s32.totalorder (!%p208_p3), %s4121_s19, 1  ;;  %p245_p6 = scmp.lt.s32.totalorder (!%p208_p3), %s4117_s18, 1  ;;  %v4135_v0 = vmov (!%p208_p3), 0.0   ;;  %v4136_v1 = vmov (!%p208_p3), 0   ;;  %v335_v2 = vld [vmem:[%s5378_s2] sm:$0xff] (!%p208_p3)  ;;  %v337_v3 = vld [vmem:[%s5378_s2 + $0x10] sm:$0xff] (!%p208_p3) }
   0x9   : > { %s5425_s24 = smov (%p29_p4, %s5423_s24), 0  ;;  %211 = sbr.rel (%p208_p3) target bundleno = 671 (0x29f), region = 40 }
   0xa   : > { %539 = vmatprep.mubr.f32.mxu0 (!%p208_p3), %v4135_v0  ;;  %575 = vmatprep.mubr.f32.mxu1 (!%p208_p3), %v4135_v0  ;;  %v336_v4 = vld [vmem:[%s5378_s2 + $0x8] sm:$0xff] (!%p208_p3)  ;;  %v338_v5 = vld [vmem:[%s5378_s2 + $0x18] sm:$0xff] (!%p208_p3)  ;;  %v339_v7 = vld [vmem:[%s5378_s2 + $0x20] sm:$0xff] (!%p208_p3)  ;;  %vm408_vm0 = vcmask (!%p208_p3), 1044480   ;;  %vm383_vm1 = vcmask (!%p208_p3), 171008   ;;  %vm2074_vm2 = vcmask (!%p208_p3), 523264  }
   0xb   : > { %4089 = vset.pattern.permute.xlu0 (!%p208_p3), %v4136_v1  ;;  %4090 = vset.pattern.permute.xlu1 (!%p208_p3), %v4136_v1  ;;  %v340_v6 = vld [vmem:[%s5378_s2 + $0x28] sm:$0xff] (!%p208_p3)  ;;  %v342_v13 = vld [vmem:[%s5378_s2 + $0x38] sm:$0xff] (!%p208_p3)  ;;  %v341_v17 = vld [vmem:[%s5378_s2 + $0x30] sm:$0xff] (!%p208_p3)  ;;  %s3816_s8 = sshll.u32 (!%p208_p3), %s4117_s18, 4 }
   0xc   : > { %345 = vperm.xlu0 (!%p208_p3), %4089, %v335_v2   ;;  %355 = vperm.xlu1 (!%p208_p3), %4090, %v337_v3   ;;  %v4257_v26 = vld [vmem:[%s5377_s1] sm:$0xff] (!%p208_p3)  ;;  %v4262_v27 = vld [vmem:[%s5377_s1 + $0x30] sm:$0xff] (!%p208_p3)  ;;  %v4273_v32 = vld [vmem:[%s5377_s1 + $0x8] sm:$0xff] (!%p208_p3)  ;;  %s3073_s9 = ssub.s32 (!%p208_p3), 21, %s3816_s8 }
   0xd   : > { %v4278_v33 = vld [vmem:[%s5377_s1 + $0x38] sm:$0xff] (!%p208_p3)  ;;  %v4301_v44 = vld [vmem:[%s5377_s1 + $0x10] sm:$0xff] (!%p208_p3)  ;;  %v4331_v53 = vld [vmem:[%s5377_s1 + $0x20] sm:$0xff] (!%p208_p3)  ;;  %p3074_p8 = scmp.lt.s32.totalorder (!%p208_p3), %s3073_s9, 22 }
   0xe   : > { %v4316_v48 = vld [vmem:[%s5377_s1 + $0x18] sm:$0xff] (!%p208_p3)  ;;  %v4344_v55 = vld [vmem:[%s5377_s1 + $0x28] sm:$0xff] (!%p208_p3)  ;;  %v3496_v62 = vld [vmem:[%s5380_s4] sm:$0xf] (!%p208_p3) }
  0x10   : > { %s5427_s19 = smov (!%p243_p5, %s4121_s19), 1  ;;  %350 = vperm.xlu0 %4089, %v336_v4   ;;  %360 = vperm.xlu1 %4090, %v338_v5   ;;  %s5431_s9 = smov (!%p3074_p8, %s3073_s9), 22 }
  0x11   : > { %s4205_s25 = scalar_select %p245_p6, %s4117_s18, 1 }
  0x12   : > { %s4046_s30 = smul.u32 132, %s5427_s19 }
  0x13   : > { %s4045_s6 = smul.u32 66, %s4205_s25  ;;  %s3659_s18 = sshll.u32 %s4205_s25, 4 }
  0x14   : > { %370 = vperm.xlu1 %4090, %v340_v6   ;;  %365 = vperm.xlu0 %4089, %v339_v7  }
  0x15   : > { %s249_s11 = sadd.s32 %s4046_s30, %s4045_s6 }
  0x16   : > { %s3658_s12 = sshll.u32 %s249_s11, 3  ;;  %s3818_s11 = sshll.u32 %s5431_s9, 7 }
  0x17   : > { %s4224_s15 = scalar_lea.vmem %s5376_s0, %s3658_s12  ;;  %s3660_s12 = sshll.u32 %s5427_s19, 5 }
  0x18   : > { %v270_v8 = vld [vmem:[%s4224_s15 + $0x8] sm:$0xff]  ;;  %v292_v9 = vld [vmem:[%s4224_s15 + $0xb8] sm:$0xff]  ;;  %v269_v10 = vld [vmem:[%s4224_s15] sm:$0xff]  ;;  %380 = vperm.xlu1 %4090, %v342_v13   ;;  %375 = vperm.xlu0 %4089, %v341_v17   ;;  %s258_s13 = sadd.s32 %s3660_s12, %s3659_s18 }
  0x19   : > { %v3821_v11 = vpack.c.bf16 %v292_v9, %v270_v8  ;;  %v291_v12 = vld [vmem:[%s4224_s15 + $0xb0] sm:$0xff]  ;;  %v314_v15 = vld [vmem:[%s4224_s15 + $0x168] sm:$0x1f]  ;;  %v296_v18 = vld [vmem:[%s4224_s15 + $0xd8] sm:$0xff]  ;;  %s3661_s19 = sshll.u32 %s258_s13, 2 }
  0x1a   : > { %v3823_v14 = vpack.c.bf16 %v291_v12, %v269_v10  ;;  %v274_v16 = vld [vmem:[%s4224_s15 + $0x28] sm:$0xff]  ;;  %v272_v19 = vld [vmem:[%s4224_s15 + $0x18] sm:$0xff]  ;;  %v273_v21 = vld [vmem:[%s4224_s15 + $0x20] sm:$0xff]  ;;  %s5175_s16 = scalar_lea.vmem %s5381_s5, %s3661_s19 }
  0x1b   : > { %3822 = vmatprep.subr.bf16.mxu0 %v3821_v11  ;;  %4041 = vmatprep.subr.bf16.mxu1 %v3821_v11  ;;  %v294_v20 = vld [vmem:[%s4224_s15 + $0xc8] sm:$0xff]  ;;  %v295_v22 = vld [vmem:[%s4224_s15 + $0xd0] sm:$0xff]  ;;  %v313_v23 = vld [vmem:[%s4224_s15 + $0x160] sm:$0x1f]  ;;  %v3829_v28 = vpack.c.bf16 %v296_v18, %v274_v16 }
  0x1c   : > { %3824 = vmatpush1.bf16.msra.mxu0 %v3823_v14  ;;  %4043 = vmatpush1.bf16.msra.mxu1 %v3823_v14  ;;  %v271_v24 = vld [vmem:[%s4224_s15 + $0x10] sm:$0xff]  ;;  %v293_v25 = vld [vmem:[%s4224_s15 + $0xc0] sm:$0xff]  ;;  %v3825_v29 = vpack.c.bf16 %v294_v20, %v272_v19  ;;  %v3831_v30 = vpack.c.bf16 %v295_v22, %v273_v21  ;;  %v316_v34 = vld [vmem:[%s4224_s15 + $0x178] sm:$0x1f] }
  0x1d   : > { %3662 = vmatprep.subr.msk.mxu0 %vm408_vm0, %v314_v15  ;;  %4042 = vmatprep.subr.msk.mxu1 %vm408_vm0, %v314_v15  ;;  %v3827_v31 = vpack.c.bf16 %v293_v25, %v271_v24  ;;  %v315_v35 = vld [vmem:[%s4224_s15 + $0x170] sm:$0x1f]  ;;  %v318_v36 = vld [vmem:[%s4224_s15 + $0x188] sm:$0x1f]  ;;  %v276_v37 = vld [vmem:[%s4224_s15 + $0x38] sm:$0xff] }
  0x1e   : > { %v298_v38 = vld [vmem:[%s4224_s15 + $0xe8] sm:$0xff]  ;;  %v300_v40 = vld [vmem:[%s4224_s15 + $0xf8] sm:$0xff]  ;;  %v317_v41 = vld [vmem:[%s4224_s15 + $0x180] sm:$0x1f]  ;;  %3499 = vperm.xlu0 %4089, %v3496_v62  }
  0x1f   : > { %v278_v39 = vld [vmem:[%s4224_s15 + $0x48] sm:$0xff]  ;;  %v275_v42 = vld [vmem:[%s4224_s15 + $0x30] sm:$0xff]  ;;  %v297_v43 = vld [vmem:[%s4224_s15 + $0xe0] sm:$0xff]  ;;  %v3833_v45 = vpack.c.bf16 %v298_v38, %v276_v37 }
  0x20   : > { %3663 = vmatpush1.msk.msra.mxu0 %vm408_vm0, %v313_v23  ;;  %4044 = vmatpush1.msk.msra.mxu1 %vm408_vm0, %v313_v23  ;;  %v3837_v46 = vpack.c.bf16 %v300_v40, %v278_v39  ;;  %v3835_v47 = vpack.c.bf16 %v297_v43, %v275_v42  ;;  %v320_v49 = vld [vmem:[%s4224_s15 + $0x198] sm:$0x1f]  ;;  %v302_v51 = vld [vmem:[%s4224_s15 + $0x108] sm:$0xff]  ;;  %v319_v52 = vld [vmem:[%s4224_s15 + $0x190] sm:$0x1f] }
  0x21   : > { %3664 = vmatmul.mubr.msk.f32.vlgmr.msra.gmra.mrb[0].mxu0 %vm383_vm1, %v4257_v26  ;;  %3670 = vmatmul.mubr.msk.f32.vlgmr.msra.gmra.mrb[0].mxu1 %vm383_vm1, %v4262_v27  ;;  %v280_v50 = vld [vmem:[%s4224_s15 + $0x58] sm:$0xff]  ;;  %v277_v56 = vld [vmem:[%s4224_s15 + $0x40] sm:$0xff]  ;;  %v299_v57 = vld [vmem:[%s4224_s15 + $0xf0] sm:$0xff] }
  0x22   : > { %3830 = vmatprep.subr.bf16.mxu0 %v3829_v28  ;;  %3826 = vmatprep.subr.bf16.mxu1 %v3825_v29  ;;  %v3841_v54 = vpack.c.bf16 %v302_v51, %v280_v50  ;;  %v3839_v58 = vpack.c.bf16 %v299_v57, %v277_v56  ;;  %v322_v59 = vld [vmem:[%s4224_s15 + $0x1a8] sm:$0x1f]  ;;  %v304_v61 = vld [vmem:[%s4224_s15 + $0x118] sm:$0xff]  ;;  %v321_v63 = vld [vmem:[%s4224_s15 + $0x1a0] sm:$0x1f] }
  0x23   : > { %3832 = vmatpush1.bf16.msra.mxu0 %v3831_v30  ;;  %545 = vmatprep.mubr.f32.mxu0 %v4135_v0  ;;  %v282_v60 = vld [vmem:[%s4224_s15 + $0x68] sm:$0xff]  ;;  %v279_v2 = vld [vmem:[%s4224_s15 + $0x50] sm:$0xff]  ;;  %v301_v3 = vld [vmem:[%s4224_s15 + $0x100] sm:$0xff] }
  0x24   : > { %581 = vmatprep.mubr.f32.mxu1 %v4135_v0  ;;  %3828 = vmatpush1.bf16.msra.mxu1 %v3827_v31  ;;  %v3845_v1 = vpack.c.bf16 %v304_v61, %v282_v60  ;;  %v3843_v4 = vpack.c.bf16 %v301_v3, %v279_v2  ;;  %v324_v5 = vld [vmem:[%s4224_s15 + $0x1b8] sm:$0x1f]  ;;  %v306_v7 = vld [vmem:[%s4224_s15 + $0x128] sm:$0xff]  ;;  %v323_v8 = vld [vmem:[%s4224_s15 + $0x1b0] sm:$0x1f] }
  0x25   : > { %3665 = vmatmul.mubr.msk.f32.gmra.mrb[2].mxu0 %vm383_vm1, %v4273_v32  ;;  %3671 = vmatmul.mubr.msk.f32.gmra.mrb[2].mxu1 %vm383_vm1, %v4278_v33  ;;  %v284_v6 = vld [vmem:[%s4224_s15 + $0x78] sm:$0xff]  ;;  %v281_v10 = vld [vmem:[%s4224_s15 + $0x60] sm:$0xff]  ;;  %v303_v11 = vld [vmem:[%s4224_s15 + $0x110] sm:$0xff] }
  0x26   : > { %3672 = vmatprep.subr.msk.mxu1 %vm408_vm0, %v316_v34  ;;  %551 = vmatprep.mubr.f32.mxu0 %v4135_v0  ;;  %v3849_v9 = vpack.c.bf16 %v306_v7, %v284_v6  ;;  %v3847_v12 = vpack.c.bf16 %v303_v11, %v281_v10  ;;  %v326_v13 = vld [vmem:[%s4224_s15 + $0x1c8] sm:$0x1f]  ;;  %v308_v15 = vld [vmem:[%s4224_s15 + $0x138] sm:$0xff]  ;;  %v325_v16 = vld [vmem:[%s4224_s15 + $0x1c0] sm:$0x1f] }
  0x27   : > { %652 = vmatprep.mubr.f32.mxu1 %v4135_v0  ;;  %3682 = vmatprep.subr.msk.mxu0 %vm408_vm0, %v318_v36  ;;  %v286_v14 = vld [vmem:[%s4224_s15 + $0x88] sm:$0xff]  ;;  %v283_v18 = vld [vmem:[%s4224_s15 + $0x70] sm:$0xff]  ;;  %v305_v19 = vld [vmem:[%s4224_s15 + $0x120] sm:$0xff] }
  0x28   : > { %3673 = vmatpush1.msk.msra.mxu1 %vm408_vm0, %v315_v35  ;;  %3683 = vmatpush1.msk.msra.mxu0 %vm408_vm0, %v317_v41  ;;  %v3853_v17 = vpack.c.bf16 %v308_v15, %v286_v14  ;;  %v3851_v20 = vpack.c.bf16 %v305_v19, %v283_v18  ;;  %v328_v21 = vld [vmem:[%s4224_s15 + $0x1d8] sm:$0x1f]  ;;  %v310_v23 = vld [vmem:[%s4224_s15 + $0x148] sm:$0xff]  ;;  %v327_v24 = vld [vmem:[%s4224_s15 + $0x1d0] sm:$0x1f] }
  0x29   : > { %3666 = vmatmul.mubr.msk.f32.gmra.mrb[4].mxu0 %vm383_vm1, %v4301_v44  ;;  %3674 = vmatmul.mubr.msk.f32.vlgmr.msra.gmra.mrb[4].mxu1 %vm383_vm1, %v4257_v26  ;;  %v288_v22 = vld [vmem:[%s4224_s15 + $0x98] sm:$0xff]  ;;  %v285_v28 = vld [vmem:[%s4224_s15 + $0x80] sm:$0xff]  ;;  %v307_v29 = vld [vmem:[%s4224_s15 + $0x130] sm:$0xff] }
  0x2a   : > { %557 = vmatprep.mubr.f32.mxu0 %v4135_v0  ;;  %658 = vmatprep.mubr.f32.mxu1 %v4135_v0  ;;  %v3857_v25 = vpack.c.bf16 %v310_v23, %v288_v22  ;;  %v3855_v30 = vpack.c.bf16 %v307_v29, %v285_v28  ;;  %v330_v31 = vld [vmem:[%s4224_s15 + $0x1e8] sm:$0x1f]  ;;  %v312_v35 = vld [vmem:[%s4224_s15 + $0x158] sm:$0xff]  ;;  %v329_v36 = vld [vmem:[%s4224_s15 + $0x1e0] sm:$0x1f] }
  0x2b   : > { %3834 = vmatprep.subr.bf16.mxu1 %v3833_v45  ;;  %3838 = vmatprep.subr.bf16.mxu0 %v3837_v46  ;;  %v290_v34 = vld [vmem:[%s4224_s15 + $0xa8] sm:$0xff]  ;;  %v287_v38 = vld [vmem:[%s4224_s15 + $0x90] sm:$0xff]  ;;  %v309_v39 = vld [vmem:[%s4224_s15 + $0x140] sm:$0xff] }
  0x2c   : > { %3836 = vmatpush1.bf16.msra.mxu1 %v3835_v47  ;;  %v3861_v37 = vpack.c.bf16 %v312_v35, %v290_v34  ;;  %v3859_v40 = vpack.c.bf16 %v309_v39, %v287_v38  ;;  %v332_v41 = vld [vmem:[%s4224_s15 + $0x1f8] sm:$0x1f]  ;;  %v331_v42 = vld [vmem:[%s4224_s15 + $0x1f0] sm:$0x1f]  ;;  %v289_v43 = vld [vmem:[%s4224_s15 + $0xa0] sm:$0xff] }
  0x2d   : > { %3667 = vmatmul.mubr.msk.f32.gmra.mrb[6].mxu0 %vm383_vm1, %v4316_v48  ;;  %3675 = vmatmul.mubr.msk.f32.gmra.mrb[6].mxu1 %vm383_vm1, %v4273_v32  ;;  %v311_v45 = vld [vmem:[%s4224_s15 + $0x150] sm:$0xff]  ;;  %v334_v47 = vld [vmem:[%s4224_s15 + $0x208] sm:$0x1f] }
  0x2e   : > { %563 = vmatprep.mubr.f32.mxu0 %v4135_v0  ;;  %664 = vmatprep.mubr.f32.mxu1 %v4135_v0  ;;  %v3863_v46 = vpack.c.bf16 %v311_v45, %v289_v43 }
  0x2f   : > { %3692 = vmatprep.subr.msk.mxu1 %vm408_vm0, %v320_v49  ;;  %v333_v49 = vld [vmem:[%s4224_s15 + $0x200] sm:$0x1f]  ;;  %s3069_s15 = ssub.s32 3, %s3816_s8 }
  0x30   : > { %3693 = vmatpush1.msk.msra.mxu1 %vm408_vm0, %v319_v52  ;;  %p3070_p7 = scmp.gt.s32.totalorder %s3069_s15, 0 }
  0x31   : > { %3668 = vmatmul.mubr.msk.f32.gmra.mrb[8].mxu0 %vm383_vm1, %v4331_v53  ;;  %3676 = vmatmul.mubr.msk.f32.gmra.mrb[8].mxu1 %vm383_vm1, %v4301_v44 }
  0x32   : > { %569 = vmatprep.mubr.f32.mxu0 %v4135_v0  ;;  %670 = vmatprep.mubr.f32.mxu1 %v4135_v0  ;;  %s5429_s15 = smov (!%p3070_p7, %s3069_s15), 0 }
  0x33   : > { %3842 = vmatprep.subr.bf16.mxu1 %v3841_v54  ;;  %s3817_s10 = sshll.u32 %s5429_s15, 7 }
  0x35   : > { %3669 = vmatmul.mubr.msk.f32.gmra.mrb[10].mxu0 %vm383_vm1, %v4344_v55  ;;  %3677 = vmatmul.mubr.msk.f32.gmra.mrb[10].mxu1 %vm383_vm1, %v4316_v48 }
  0x36   : > { %676 = vmatprep.mubr.f32.mxu1 %v4135_v0  ;;  %765 = vmatprep.mubr.f32.mxu0 %v4135_v0 }
  0x39   : > { %3678 = vmatmul.mubr.msk.f32.gmra.mrb[12].mxu1 %vm383_vm1, %v4331_v53  ;;  %3684 = vmatmul.mubr.msk.f32.vlgmr.msra.gmra.mrb[12].mxu0 %vm383_vm1, %v4257_v26 }
  0x3a   : > { %3840 = vmatpush1.bf16.msra.mxu0 %v3839_v58  ;;  %682 = vmatprep.mubr.f32.mxu1 %v4135_v0 }
  0x3b   : > { %771 = vmatprep.mubr.f32.mxu0 %v4135_v0  ;;  %3702 = vmatprep.subr.msk.mxu0 %vm408_vm0, %v322_v59 }
  0x3d   : > { %3679 = vmatmul.mubr.msk.f32.gmra.mrb[14].mxu1 %vm383_vm1, %v4344_v55  ;;  %3685 = vmatmul.mubr.msk.f32.gmra.mrb[14].mxu0 %vm383_vm1, %v4273_v32 }
  0x3e   : > { %688 = vmatprep.mubr.f32.mxu1 %v4135_v0  ;;  %777 = vmatprep.mubr.f32.mxu0 %v4135_v0 }
  0x3f   : > { %3703 = vmatpush1.msk.msra.mxu0 %vm408_vm0, %v321_v63 }
  0x40   : > { %3846 = vmatprep.subr.bf16.mxu0 %v3845_v1 }
  0x41   : > { %3680 = vmatmul.mubr.msk.f32.gmra.mrb[16].mxu1 %vm383_vm1, %v4262_v27  ;;  %3686 = vmatmul.mubr.msk.f32.gmra.mrb[16].mxu0 %vm383_vm1, %v4301_v44 }
  0x42   : > { %694 = vmatprep.mubr.f32.mxu1 %v4135_v0  ;;  %783 = vmatprep.mubr.f32.mxu0 %v4135_v0 }
  0x45   : > { %3681 = vmatmul.mubr.msk.f32.gmra.mrb[18].mxu1 %vm383_vm1, %v4278_v33  ;;  %3687 = vmatmul.mubr.msk.f32.gmra.mrb[18].mxu0 %vm383_vm1, %v4316_v48 }
  0x46   : > { %789 = vmatprep.mubr.f32.mxu0 %v4135_v0  ;;  %878 = vmatprep.mubr.f32.mxu1 %v4135_v0 }
  0x49   : > { %3688 = vmatmul.mubr.msk.f32.gmra.mrb[20].mxu0 %vm383_vm1, %v4331_v53  ;;  %3694 = vmatmul.mubr.msk.f32.vlgmr.msra.gmra.mrb[20].mxu1 %vm383_vm1, %v4257_v26 }
  0x4a   : > { %795 = vmatprep.mubr.f32.mxu0 %v4135_v0  ;;  %884 = vmatprep.mubr.f32.mxu1 %v4135_v0 }
  0x4b   : > { %3844 = vmatpush1.bf16.msra.mxu1 %v3843_v4 }
  0x4c   : > { %3712 = vmatprep.subr.msk.mxu1 %vm408_vm0, %v324_v5 }
  0x4d   : > { %3689 = vmatmul.mubr.msk.f32.gmra.mrb[22].mxu0 %vm383_vm1, %v4344_v55  ;;  %3695 = vmatmul.mubr.msk.f32.gmra.mrb[22].mxu1 %vm383_vm1, %v4273_v32 }
  0x4e   : > { %801 = vmatprep.mubr.f32.mxu0 %v4135_v0  ;;  %890 = vmatprep.mubr.f32.mxu1 %v4135_v0 }
  0x4f   : > { %3713 = vmatpush1.msk.msra.mxu1 %vm408_vm0, %v323_v8 }
  0x50   : > { %3850 = vmatprep.subr.bf16.mxu1 %v3849_v9 }
  0x51   : > { %3690 = vmatmul.mubr.msk.f32.gmra.mrb[24].mxu0 %vm383_vm1, %v4262_v27  ;;  %3696 = vmatmul.mubr.msk.f32.gmra.mrb[24].mxu1 %vm383_vm1, %v4301_v44 }
  0x52   : > { %807 = vmatprep.mubr.f32.mxu0 %v4135_v0  ;;  %896 = vmatprep.mubr.f32.mxu1 %v4135_v0 }
  0x55   : > { %3691 = vmatmul.mubr.msk.f32.gmra.mrb[26].mxu0 %vm383_vm1, %v4278_v33  ;;  %3697 = vmatmul.mubr.msk.f32.gmra.mrb[26].mxu1 %vm383_vm1, %v4316_v48 }
  0x56   : > { %902 = vmatprep.mubr.f32.mxu1 %v4135_v0  ;;  %991 = vmatprep.mubr.f32.mxu0 %v4135_v0 }
  0x59   : > { %3698 = vmatmul.mubr.msk.f32.gmra.mrb[28].mxu1 %vm383_vm1, %v4331_v53  ;;  %3704 = vmatmul.mubr.msk.f32.vlgmr.msra.gmra.mrb[28].mxu0 %vm383_vm1, %v4257_v26 }
  0x5a   : > { %3848 = vmatpush1.bf16.msra.mxu0 %v3847_v12  ;;  %908 = vmatprep.mubr.f32.mxu1 %v4135_v0 }
  0x5b   : > { %997 = vmatprep.mubr.f32.mxu0 %v4135_v0  ;;  %3722 = vmatprep.subr.msk.mxu0 %vm408_vm0, %v326_v13 }
  0x5d   : > { %3699 = vmatmul.mubr.msk.f32.gmra.mrb[30].mxu1 %vm383_vm1, %v4344_v55  ;;  %3705 = vmatmul.mubr.msk.f32.gmra.mrb[30].mxu0 %vm383_vm1, %v4273_v32 }
  0x5e   : > { %914 = vmatprep.mubr.f32.mxu1 %v4135_v0  ;;  %1003 = vmatprep.mubr.f32.mxu0 %v4135_v0 }
  0x5f   : > { %3723 = vmatpush1.msk.msra.mxu0 %vm408_vm0, %v325_v16 }
  0x60   : > { %3854 = vmatprep.subr.bf16.mxu0 %v3853_v17 }
  0x61   : > { %3700 = vmatmul.mubr.msk.f32.gmra.mrb[32].mxu1 %vm383_vm1, %v4262_v27  ;;  %3706 = vmatmul.mubr.msk.f32.gmra.mrb[32].mxu0 %vm383_vm1, %v4301_v44 }
  0x62   : > { %920 = vmatprep.mubr.f32.mxu1 %v4135_v0  ;;  %1009 = vmatprep.mubr.f32.mxu0 %v4135_v0 }
  0x65   : > { %3701 = vmatmul.mubr.msk.f32.gmra.mrb[34].mxu1 %vm383_vm1, %v4278_v33  ;;  %3707 = vmatmul.mubr.msk.f32.gmra.mrb[34].mxu0 %vm383_vm1, %v4316_v48 }
  0x66   : > { %1015 = vmatprep.mubr.f32.mxu0 %v4135_v0  ;;  %1104 = vmatprep.mubr.f32.mxu1 %v4135_v0 }
  0x69   : > { %3708 = vmatmul.mubr.msk.f32.gmra.mrb[36].mxu0 %vm383_vm1, %v4331_v53  ;;  %3714 = vmatmul.mubr.msk.f32.vlgmr.msra.gmra.mrb[36].mxu1 %vm383_vm1, %v4257_v26 }
  0x6a   : > { %1021 = vmatprep.mubr.f32.mxu0 %v4135_v0  ;;  %1110 = vmatprep.mubr.f32.mxu1 %v4135_v0 }
  0x6b   : > { %3852 = vmatpush1.bf16.msra.mxu1 %v3851_v20 }
  0x6c   : > { %3732 = vmatprep.subr.msk.mxu1 %vm408_vm0, %v328_v21 }
  0x6d   : > { %3709 = vmatmul.mubr.msk.f32.gmra.mrb[38].mxu0 %vm383_vm1, %v4344_v55  ;;  %3715 = vmatmul.mubr.msk.f32.gmra.mrb[38].mxu1 %vm383_vm1, %v4273_v32 }
  0x6e   : > { %1027 = vmatprep.mubr.f32.mxu0 %v4135_v0  ;;  %1116 = vmatprep.mubr.f32.mxu1 %v4135_v0 }
  0x6f   : > { %3733 = vmatpush1.msk.msra.mxu1 %vm408_vm0, %v327_v24 }
  0x70   : > { %3858 = vmatprep.subr.bf16.mxu1 %v3857_v25 }
  0x71   : > { %3710 = vmatmul.mubr.msk.f32.gmra.mrb[40].mxu0 %vm383_vm1, %v4262_v27  ;;  %3716 = vmatmul.mubr.msk.f32.gmra.mrb[40].mxu1 %vm383_vm1, %v4301_v44 }
  0x72   : > { %1033 = vmatprep.mubr.f32.mxu0 %v4135_v0  ;;  %1122 = vmatprep.mubr.f32.mxu1 %v4135_v0 }
  0x75   : > { %3711 = vmatmul.mubr.msk.f32.gmra.mrb[42].mxu0 %vm383_vm1, %v4278_v33  ;;  %3717 = vmatmul.mubr.msk.f32.gmra.mrb[42].mxu1 %vm383_vm1, %v4316_v48 }
  0x76   : > { %1128 = vmatprep.mubr.f32.mxu1 %v4135_v0  ;;  %1217 = vmatprep.mubr.f32.mxu0 %v4135_v0 }
  0x79   : > { %3718 = vmatmul.mubr.msk.f32.gmra.mrb[44].mxu1 %vm383_vm1, %v4331_v53  ;;  %3724 = vmatmul.mubr.msk.f32.vlgmr.msra.gmra.mrb[44].mxu0 %vm383_vm1, %v4257_v26 }
  0x7a   : > { %3856 = vmatpush1.bf16.msra.mxu0 %v3855_v30  ;;  %1134 = vmatprep.mubr.f32.mxu1 %v4135_v0 }
  0x7b   : > { %1223 = vmatprep.mubr.f32.mxu0 %v4135_v0  ;;  %3742 = vmatprep.subr.msk.mxu0 %vm408_vm0, %v330_v31 }
  0x7d   : > { %3719 = vmatmul.mubr.msk.f32.gmra.mrb[46].mxu1 %vm383_vm1, %v4344_v55  ;;  %3725 = vmatmul.mubr.msk.f32.gmra.mrb[46].mxu0 %vm383_vm1, %v4273_v32 }
  0x7e   : > { %1140 = vmatprep.mubr.f32.mxu1 %v4135_v0  ;;  %1229 = vmatprep.mubr.f32.mxu0 %v4135_v0 }
  0x7f   : > { %3743 = vmatpush1.msk.msra.mxu0 %vm408_vm0, %v329_v36 }
  0x80   : > { %3862 = vmatprep.subr.bf16.mxu0 %v3861_v37 }
  0x81   : > { %3720 = vmatmul.mubr.msk.f32.gmra.mrb[48].mxu1 %vm383_vm1, %v4262_v27  ;;  %3726 = vmatmul.mubr.msk.f32.gmra.mrb[48].mxu0 %vm383_vm1, %v4301_v44 }
  0x82   : > { %1146 = vmatprep.mubr.f32.mxu1 %v4135_v0  ;;  %1235 = vmatprep.mubr.f32.mxu0 %v4135_v0 }
  0x85   : > { %3721 = vmatmul.mubr.msk.f32.gmra.mrb[50].mxu1 %vm383_vm1, %v4278_v33  ;;  %3727 = vmatmul.mubr.msk.f32.gmra.mrb[50].mxu0 %vm383_vm1, %v4316_v48 }
  0x86   : > { %1241 = vmatprep.mubr.f32.mxu0 %v4135_v0  ;;  %1330 = vmatprep.mubr.f32.mxu1 %v4135_v0 }
  0x89   : > { %3728 = vmatmul.mubr.msk.f32.gmra.mrb[52].mxu0 %vm383_vm1, %v4331_v53  ;;  %3734 = vmatmul.mubr.msk.f32.vlgmr.msra.gmra.mrb[52].mxu1 %vm383_vm1, %v4257_v26 }
  0x8a   : > { %1247 = vmatprep.mubr.f32.mxu0 %v4135_v0  ;;  %1336 = vmatprep.mubr.f32.mxu1 %v4135_v0 }
  0x8b   : > { %3860 = vmatpush1.bf16.msra.mxu1 %v3859_v40 }
  0x8c   : > { %3752 = vmatprep.subr.msk.mxu1 %vm408_vm0, %v332_v41 }
  0x8d   : > { %3729 = vmatmul.mubr.msk.f32.gmra.mrb[54].mxu0 %vm383_vm1, %v4344_v55  ;;  %3735 = vmatmul.mubr.msk.f32.gmra.mrb[54].mxu1 %vm383_vm1, %v4273_v32 }
  0x8e   : > { %1253 = vmatprep.mubr.f32.mxu0 %v4135_v0  ;;  %1342 = vmatprep.mubr.f32.mxu1 %v4135_v0 }
  0x8f   : > { %3753 = vmatpush1.msk.msra.mxu1 %vm408_vm0, %v331_v42 }
  0x91   : > { %3730 = vmatmul.mubr.msk.f32.gmra.mrb[56].mxu0 %vm383_vm1, %v4262_v27  ;;  %3736 = vmatmul.mubr.msk.f32.gmra.mrb[56].mxu1 %vm383_vm1, %v4301_v44 }
  0x92   : > { %1259 = vmatprep.mubr.f32.mxu0 %v4135_v0  ;;  %1348 = vmatprep.mubr.f32.mxu1 %v4135_v0 }
  0x95   : > { %3731 = vmatmul.mubr.msk.f32.gmra.mrb[58].mxu0 %vm383_vm1, %v4278_v33  ;;  %3737 = vmatmul.mubr.msk.f32.gmra.mrb[58].mxu1 %vm383_vm1, %v4316_v48 }
  0x96   : > { %1354 = vmatprep.mubr.f32.mxu1 %v4135_v0  ;;  %1443 = vmatprep.mubr.f32.mxu0 %v4135_v0 }
  0x99   : > { %3738 = vmatmul.mubr.msk.f32.gmra.mrb[60].mxu1 %vm383_vm1, %v4331_v53  ;;  %3744 = vmatmul.mubr.msk.f32.vlgmr.msra.gmra.mrb[60].mxu0 %vm383_vm1, %v4257_v26 }
  0x9a   : > { %3864 = vmatpush1.bf16.msra.mxu0 %v3863_v46  ;;  %1360 = vmatprep.mubr.f32.mxu1 %v4135_v0 }
  0x9b   : > { %1449 = vmatprep.mubr.f32.mxu0 %v4135_v0  ;;  %3762 = vmatprep.subr.msk.mxu0 %vm408_vm0, %v334_v47 }
  0x9d   : > { %3739 = vmatmul.mubr.msk.f32.gmra.mrb[62].mxu1 %vm383_vm1, %v4344_v55  ;;  %3745 = vmatmul.mubr.msk.f32.gmra.mrb[62].mxu0 %vm383_vm1, %v4273_v32 }
  0x9e   : > { %1366 = vmatprep.mubr.f32.mxu1 %v4135_v0  ;;  %1455 = vmatprep.mubr.f32.mxu0 %v4135_v0 }
  0x9f   : > { %3763 = vmatpush1.msk.msra.mxu0 %vm408_vm0, %v333_v49 }
  0xa1   : > { %3740 = vmatmul.mubr.msk.f32.gmra.mrb[64].mxu1 %vm383_vm1, %v4262_v27  ;;  %3746 = vmatmul.mubr.msk.f32.gmra.mrb[64].mxu0 %vm383_vm1, %v4301_v44 }
  0xa2   : > { %1372 = vmatprep.mubr.f32.mxu1 %v4135_v0  ;;  %1461 = vmatprep.mubr.f32.mxu0 %v4135_v0 }
  0xa5   : > { %3741 = vmatmul.mubr.msk.f32.gmra.mrb[66].mxu1 %vm383_vm1, %v4278_v33  ;;  %3747 = vmatmul.mubr.msk.f32.gmra.mrb[66].mxu0 %vm383_vm1, %v4316_v48 }
  0xa6   : > { %1467 = vmatprep.mubr.f32.mxu0 %v4135_v0  ;;  %1556 = vmatprep.mubr.f32.mxu1 %v4135_v0 }
  0xa9   : > { %3748 = vmatmul.mubr.msk.f32.gmra.mrb[68].mxu0 %vm383_vm1, %v4331_v53  ;;  %3754 = vmatmul.mubr.msk.f32.vlgmr.msra.gmra.mrb[68].mxu1 %vm383_vm1, %v4257_v26 }
  0xaa   : > { %1473 = vmatprep.mubr.f32.mxu0 %v4135_v0  ;;  %1562 = vmatprep.mubr.f32.mxu1 %v4135_v0 }
  0xad   : > { %3749 = vmatmul.mubr.msk.f32.gmra.mrb[70].mxu0 %vm383_vm1, %v4344_v55  ;;  %3755 = vmatmul.mubr.msk.f32.gmra.mrb[70].mxu1 %vm383_vm1, %v4273_v32 }
  0xae   : > { %1479 = vmatprep.mubr.f32.mxu0 %v4135_v0  ;;  %1568 = vmatprep.mubr.f32.mxu1 %v4135_v0 }
  0xb1   : > { %3750 = vmatmul.mubr.msk.f32.gmra.mrb[72].mxu0 %vm383_vm1, %v4262_v27  ;;  %3756 = vmatmul.mubr.msk.f32.gmra.mrb[72].mxu1 %vm383_vm1, %v4301_v44 }
  0xb2   : > { %1485 = vmatprep.mubr.f32.mxu0 %v4135_v0  ;;  %1574 = vmatprep.mubr.f32.mxu1 %v4135_v0 }
  0xb5   : > { %3751 = vmatmul.mubr.msk.f32.gmra.mrb[74].mxu0 %vm383_vm1, %v4278_v33  ;;  %3757 = vmatmul.mubr.msk.f32.gmra.mrb[74].mxu1 %vm383_vm1, %v4316_v48 }
  0xb6   : > { %1580 = vmatprep.mubr.f32.mxu1 %v4135_v0  ;;  %1669 = vmatprep.mubr.f32.mxu0 %v4135_v0 }
  0xb9   : > { %3758 = vmatmul.mubr.msk.f32.gmra.mrb[76].mxu1 %vm383_vm1, %v4331_v53  ;;  %3764 = vmatmul.mubr.msk.f32.vlgmr.msra.gmra.mrb[76].mxu0 %vm383_vm1, %v4257_v26  ;;  %v4635_v26 = vpop.permute.xlu0 %345 }
  0xba   : > { %1586 = vmatprep.mubr.f32.mxu1 %v4135_v0  ;;  %1675 = vmatprep.mubr.f32.mxu0 %v4135_v0 }
  0xbd   : > { %3759 = vmatmul.mubr.msk.f32.gmra.mrb[78].mxu1 %vm383_vm1, %v4344_v55  ;;  %3765 = vmatmul.mubr.msk.f32.gmra.mrb[78].mxu0 %vm383_vm1, %v4273_v32  ;;  %v4637_v32 = vpop.permute.xlu1 %355 }
  0xbe   : > { %1592 = vmatprep.mubr.f32.mxu1 %v4135_v0  ;;  %1681 = vmatprep.mubr.f32.mxu0 %v4135_v0 }
  0xc1   : > { %3760 = vmatmul.mubr.msk.f32.gmra.mrb[80].mxu1 %vm383_vm1, %v4262_v27  ;;  %3766 = vmatmul.mubr.msk.f32.gmra.mrb[80].mxu0 %vm383_vm1, %v4301_v44  ;;  %v4639_v44 = vpop.permute.xlu0 %350 }
  0xc2   : > { %1598 = vmatprep.mubr.f32.mxu1 %v4135_v0  ;;  %1687 = vmatprep.mubr.f32.mxu0 %v4135_v0 }
  0xc5   : > { %3761 = vmatmul.mubr.msk.f32.gmra.mrb[82].mxu1 %vm383_vm1, %v4278_v33  ;;  %3767 = vmatmul.mubr.msk.f32.gmra.mrb[82].mxu0 %vm383_vm1, %v4316_v48  ;;  %v4641_v48 = vpop.permute.xlu1 %360  ;;  %v4643_v50 = vpop.permute.xlu0 %365 }
  0xc6   : > { %1693 = vmatprep.mubr.f32.mxu0 %v4135_v0  ;;  %2151 = vmatprep.mubr.f32.mxu1 %v4135_v0 }
  0xc9   : > { %3768 = vmatmul.mubr.msk.f32.gmra.mrb[84].mxu0 %vm383_vm1, %v4331_v53  ;;  %v4645_v51 = vpop.permute.xlu1 %370 }
  0xca   : > { %1699 = vmatprep.mubr.f32.mxu0 %v4135_v0 }
  0xcd   : > { %3769 = vmatmul.mubr.msk.f32.gmra.mrb[86].mxu0 %vm383_vm1, %v4344_v55  ;;  %v4652_v58 = vpop.permute.xlu1 %380 }
  0xce   : > { %1705 = vmatprep.mubr.f32.mxu0 %v4135_v0 }
  0xd1   : > { %3770 = vmatmul.mubr.msk.f32.gmra.mrb[88].mxu0 %vm383_vm1, %v4262_v27  ;;  %v4647_v27 = vpop.permute.xlu0 %375 }
  0xd2   : > { %1711 = vmatprep.mubr.f32.mxu0 %v4135_v0 }
  0xd5   : > { %3771 = vmatmul.mubr.msk.f32.gmra.mrb[90].mxu0 %vm383_vm1, %v4278_v33 }
  0xd6   : > { %2319 = vmatprep.mubr.f32.mxu0 %v4135_v0 }
  0xf4   : > { %v541_v52 = vpop.f32.mrb[0].mxu0  ;;  %v577_v53 = vpop.f32.mrb[0].mxu1 }
  0xf5   : > { %v542_v33 = vadd.f32 %v541_v52, %v4635_v26  ;;  %v543_v54 = vpop.f32.mrb[1].mxu0  ;;  %v579_v55 = vpop.f32.mrb[1].mxu1  ;;  %v578_v56 = vadd.f32 %v577_v53, %v4647_v27 }
  0xf6   : > { %v544_v57 = vadd.f32 %v543_v54, %v4635_v26  ;;  %v580_v59 = vadd.f32 %v579_v55, %v4647_v27 }
  0xf7   : > { %v1718_v60 = vmax.f32 %v542_v33, 0.0  ;;  %v1850_v61 = vmax.f32 %v578_v56, 0.0 }
  0xf8   : > { %v1719_v62 = vmax.f32 %v544_v57, 0.0  ;;  %v547_v63 = vpop.f32.mrb[2].mxu0  ;;  %v583_v1 = vpop.f32.mrb[2].mxu1  ;;  %v1851_v2 = vmax.f32 %v580_v59, 0.0 }
  0xf9   : > { %v548_v3 = vadd.f32 %v547_v63, %v4639_v44  ;;  %v549_v4 = vpop.f32.mrb[3].mxu0  ;;  %v585_v5 = vpop.f32.mrb[3].mxu1  ;;  %v584_v6 = vadd.f32 %v583_v1, %v4652_v58  ;;  %v1894_v9 = vmin.f32 %v1718_v60, 6.0  ;;  %v4659_v12 = vmin.f32 %v1850_v61, 6.0 }
  0xfa   : > { %v550_v7 = vadd.f32 %v549_v4, %v4639_v44  ;;  %v586_v8 = vadd.f32 %v585_v5, %v4652_v58  ;;  %v1895_v13 = vmin.f32 %v1719_v62, 6.0  ;;  %v4661_v17 = vmin.f32 %v1851_v2, 6.0 }
  0xfb   : > { %v1740_v10 = vmax.f32 %v548_v3, 0.0  ;;  %v1872_v11 = vmax.f32 %v584_v6, 0.0 }
  0xfc   : > { %v1741_v14 = vmax.f32 %v550_v7, 0.0  ;;  %v553_v15 = vpop.f32.mrb[4].mxu0  ;;  %v1873_v16 = vmax.f32 %v586_v8, 0.0  ;;  %v654_v18 = vpop.f32.mrb[4].mxu1 }
  0xfd   : > { %v1916_v19 = vmin.f32 %v1740_v10, 6.0  ;;  %v554_v20 = vadd.f32 %v553_v15, %v4637_v32  ;;  %v555_v21 = vpop.f32.mrb[5].mxu0  ;;  %v655_v22 = vadd.f32 %v654_v18, %v4635_v26  ;;  %v656_v23 = vpop.f32.mrb[5].mxu1  ;;  %v4665_v24 = vmin.f32 %v1872_v11, 6.0 }
  0xfe   : > { %v1917_v25 = vmin.f32 %v1741_v14, 6.0  ;;  %v556_v28 = vadd.f32 %v555_v21, %v4637_v32  ;;  %v4668_v29 = vmin.f32 %v1873_v16, 6.0  ;;  %v657_v30 = vadd.f32 %v656_v23, %v4635_v26 }
  0xff   : > { %v3867_v31 = vpack.c.bf16 %v1916_v19, %v1894_v9  ;;  %v1762_v34 = vmax.f32 %v554_v20, 0.0  ;;  %v1720_v35 = vmax.f32 %v655_v22, 0.0  ;;  %v3879_v36 = vpack.c.bf16 %v4665_v24, %v4659_v12 }
 0x100   : > { %v3865_v37 = vpack.c.bf16 %v1917_v25, %v1895_v13  ;;  %v1763_v38 = vmax.f32 %v556_v28, 0.0  ;;  %v559_v39 = vpop.f32.mrb[6].mxu0  ;;  %v3877_v40 = vpack.c.bf16 %v4668_v29, %v4661_v17  ;;  %v1721_v41 = vmax.f32 %v657_v30, 0.0  ;;  %v660_v42 = vpop.f32.mrb[6].mxu1 }
 0x101   : > { %v560_v43 = vadd.f32 %v559_v39, %v4641_v48  ;;  %v561_v45 = vpop.f32.mrb[7].mxu0  ;;  %v661_v46 = vadd.f32 %v660_v42, %v4639_v44  ;;  %v662_v47 = vpop.f32.mrb[7].mxu1  ;;  %v1938_v53 = vmin.f32 %v1762_v34, 6.0  ;;  %v4679_v54 = vmin.f32 %v1720_v35, 6.0 }
 0x102   : > { %v562_v49 = vadd.f32 %v561_v45, %v4641_v48  ;;  %3866 = vmatprep.subr.bf16.mxu1 %v3865_v37  ;;  %v663_v52 = vadd.f32 %v662_v47, %v4639_v44  ;;  %v1939_v56 = vmin.f32 %v1763_v38, 6.0  ;;  %v4681_v60 = vmin.f32 %v1721_v41, 6.0 }
 0x103   : > { %v1784_v33 = vmax.f32 %v560_v43, 0.0  ;;  %3868 = vmatpush1.bf16.msra.mxu1 %v3867_v31  ;;  %v1742_v55 = vmax.f32 %v661_v46, 0.0 }
 0x104   : > { %v1785_v57 = vmax.f32 %v562_v49, 0.0  ;;  %v565_v59 = vpop.f32.mrb[8].mxu0  ;;  %v1743_v61 = vmax.f32 %v663_v52, 0.0  ;;  %v666_v62 = vpop.f32.mrb[8].mxu1 }
 0x105   : > { %v1960_v63 = vmin.f32 %v1784_v33, 6.0  ;;  %v566_v1 = vadd.f32 %v565_v59, %v4643_v50  ;;  %v567_v2 = vpop.f32.mrb[9].mxu0  ;;  %v4684_v3 = vmin.f32 %v1742_v55, 6.0  ;;  %v667_v4 = vadd.f32 %v666_v62, %v4637_v32  ;;  %v668_v5 = vpop.f32.mrb[9].mxu1 }
 0x106   : > { %v1961_v6 = vmin.f32 %v1785_v57, 6.0  ;;  %v568_v7 = vadd.f32 %v567_v2, %v4643_v50  ;;  %v4688_v8 = vmin.f32 %v1743_v61, 6.0  ;;  %v669_v9 = vadd.f32 %v668_v5, %v4637_v32 }
 0x107   : > { %v3871_v10 = vpack.c.bf16 %v1960_v63, %v1938_v53  ;;  %v1806_v11 = vmax.f32 %v566_v1, 0.0  ;;  %v3883_v13 = vpack.c.bf16 %v4684_v3, %v4679_v54  ;;  %v1764_v14 = vmax.f32 %v667_v4, 0.0 }
 0x108   : > { %v3869_v15 = vpack.c.bf16 %v1961_v6, %v1939_v56  ;;  %v1807_v16 = vmax.f32 %v568_v7, 0.0  ;;  %v571_v18 = vpop.f32.mrb[10].mxu0  ;;  %v3881_v19 = vpack.c.bf16 %v4688_v8, %v4681_v60  ;;  %v1765_v20 = vmax.f32 %v669_v9, 0.0  ;;  %v672_v21 = vpop.f32.mrb[10].mxu1 }
 0x109   : > { %v572_v22 = vadd.f32 %v571_v18, %v4645_v51  ;;  %v573_v23 = vpop.f32.mrb[11].mxu0  ;;  %v673_v25 = vadd.f32 %v672_v21, %v4641_v48  ;;  %v674_v28 = vpop.f32.mrb[11].mxu1  ;;  %v1982_v34 = vmin.f32 %v1806_v11, 6.0  ;;  %v4699_v37 = vmin.f32 %v1764_v14, 6.0 }
 0x10a   : > { %v574_v30 = vadd.f32 %v573_v23, %v4645_v51  ;;  %3870 = vmatprep.subr.bf16.mxu1 %v3869_v15  ;;  %v675_v31 = vadd.f32 %v674_v28, %v4641_v48  ;;  %v1983_v39 = vmin.f32 %v1807_v16, 6.0  ;;  %v4701_v43 = vmin.f32 %v1765_v20, 6.0 }
 0x10b   : > { %v1828_v35 = vmax.f32 %v572_v22, 0.0  ;;  %3872 = vmatpush1.bf16.msra.mxu1 %v3871_v10  ;;  %v1786_v38 = vmax.f32 %v673_v25, 0.0 }
 0x10c   : > { %v1829_v41 = vmax.f32 %v574_v30, 0.0  ;;  %v767_v42 = vpop.f32.mrb[12].mxu0  ;;  %v1787_v45 = vmax.f32 %v675_v31, 0.0  ;;  %v678_v46 = vpop.f32.mrb[12].mxu1 }
 0x10d   : > { %v2004_v47 = vmin.f32 %v1828_v35, 6.0  ;;  %v768_v49 = vadd.f32 %v767_v42, %v4635_v26  ;;  %v769_v52 = vpop.f32.mrb[13].mxu0  ;;  %v4704_v53 = vmin.f32 %v1786_v38, 6.0  ;;  %v679_v33 = vadd.f32 %v678_v46, %v4643_v50  ;;  %v680_v55 = vpop.f32.mrb[13].mxu1 }
 0x10e   : > { %v2005_v56 = vmin.f32 %v1829_v41, 6.0  ;;  %v770_v57 = vadd.f32 %v769_v52, %v4635_v26  ;;  %v4708_v59 = vmin.f32 %v1787_v45, 6.0  ;;  %v681_v61 = vadd.f32 %v680_v55, %v4643_v50 }
 0x10f   : > { %v3875_v62 = vpack.c.bf16 %v2004_v47, %v1982_v34  ;;  %v1722_v63 = vmax.f32 %v768_v49, 0.0  ;;  %v3887_v1 = vpack.c.bf16 %v4704_v53, %v4699_v37  ;;  %v1808_v2 = vmax.f32 %v679_v33, 0.0 }
 0x110   : > { %v3873_v4 = vpack.c.bf16 %v2005_v56, %v1983_v39  ;;  %v1723_v5 = vmax.f32 %v770_v57, 0.0  ;;  %v773_v6 = vpop.f32.mrb[14].mxu0  ;;  %v3885_v7 = vpack.c.bf16 %v4708_v59, %v4701_v43  ;;  %v1809_v9 = vmax.f32 %v681_v61, 0.0  ;;  %v684_v10 = vpop.f32.mrb[14].mxu1  ;;  %v4740_v56 = vld [vmem:[%s5379_s3] sm:$0xff] }
 0x111   : > { %v774_v11 = vadd.f32 %v773_v6, %v4639_v44  ;;  %v775_v14 = vpop.f32.mrb[15].mxu0  ;;  %v685_v15 = vadd.f32 %v684_v10, %v4645_v51  ;;  %v686_v16 = vpop.f32.mrb[15].mxu1  ;;  %v1898_v21 = vmin.f32 %v1722_v63, 6.0  ;;  %v4719_v23 = vmin.f32 %v1808_v2, 6.0 }
 0x112   : > { %v776_v18 = vadd.f32 %v775_v14, %v4639_v44  ;;  %3874 = vmatprep.subr.bf16.mxu1 %v3873_v4  ;;  %v687_v20 = vadd.f32 %v686_v16, %v4645_v51  ;;  %v1899_v28 = vmin.f32 %v1723_v5, 6.0  ;;  %v4724_v34 = vmin.f32 %v1809_v9, 6.0  ;;  %v4760_v14 = vld [vmem:[%s5379_s3 + $0x8] sm:$0xff] }
 0x113   : > { %v1744_v22 = vmax.f32 %v774_v11, 0.0  ;;  %3876 = vmatpush1.bf16.msra.mxu1 %v3875_v62  ;;  %v1830_v25 = vmax.f32 %v685_v15, 0.0 }
 0x114   : > { %v1745_v30 = vmax.f32 %v776_v18, 0.0  ;;  %v779_v31 = vpop.f32.mrb[16].mxu0  ;;  %3878 = vmatprep.subr.bf16.mxu1 %v3877_v40  ;;  %v1831_v35 = vmax.f32 %v687_v20, 0.0  ;;  %v690_v38 = vpop.f32.mrb[16].mxu1 }
 0x115   : > { %v1920_v39 = vmin.f32 %v1744_v22, 6.0  ;;  %v780_v41 = vadd.f32 %v779_v31, %v4637_v32  ;;  %v781_v42 = vpop.f32.mrb[17].mxu0  ;;  %v4727_v45 = vmin.f32 %v1830_v25, 6.0  ;;  %v691_v46 = vadd.f32 %v690_v38, %v4647_v27  ;;  %v692_v47 = vpop.f32.mrb[17].mxu1 }
 0x116   : > { %v1921_v49 = vmin.f32 %v1745_v30, 6.0  ;;  %v782_v52 = vadd.f32 %v781_v42, %v4637_v32  ;;  %v2007_v33 = vmin.f32 %v1831_v35, 6.0  ;;  %v693_v17 = vadd.f32 %v692_v47, %v4647_v27 }
 0x117   : > { %v3899_v29 = vpack.c.bf16 %v1920_v39, %v1898_v21  ;;  %v1766_v40 = vmax.f32 %v780_v41, 0.0  ;;  %3880 = vmatpush1.bf16.msra.mxu1 %v3879_v36  ;;  %v3891_v55 = vpack.c.bf16 %v4727_v45, %v4719_v23  ;;  %v1852_v57 = vmax.f32 %v691_v46, 0.0  ;;  %v4780_v41 = vld [vmem:[%s5379_s3 + $0x10] sm:$0xff] }
 0x118   : > { %v3897_v61 = vpack.c.bf16 %v1921_v49, %v1899_v28  ;;  %v1767_v62 = vmax.f32 %v782_v52, 0.0  ;;  %v785_v63 = vpop.f32.mrb[18].mxu0  ;;  %3882 = vmatprep.subr.bf16.mxu1 %v3881_v19  ;;  %v3889_v2 = vpack.c.bf16 %v2007_v33, %v4724_v34  ;;  %v1853_v12 = vmax.f32 %v693_v17, 0.0  ;;  %v696_v24 = vpop.f32.mrb[18].mxu1 }
 0x119   : > { %v786_v36 = vadd.f32 %v785_v63, %v4641_v48  ;;  %v787_v4 = vpop.f32.mrb[19].mxu0  ;;  %v697_v5 = vadd.f32 %v696_v24, %v4652_v58  ;;  %v698_v6 = vpop.f32.mrb[19].mxu1  ;;  %v1942_v60 = vmin.f32 %v1766_v40, 6.0  ;;  %v4755_v19 = vmin.f32 %v1852_v57, 6.0 }
 0x11a   : > { %v788_v9 = vadd.f32 %v787_v4, %v4641_v48  ;;  %3898 = vmatprep.subr.bf16.mxu0 %v3897_v61  ;;  %3772 = vmatmul.mubr.msk.f32.vlgmr.msra.gmra.mrb[84].mxu1 %vm2074_vm2, %v4740_v56  ;;  %v699_v10 = vadd.f32 %v698_v6, %v4652_v58  ;;  %v1943_v15 = vmin.f32 %v1767_v62, 6.0  ;;  %v2029_v20 = vmin.f32 %v1853_v12, 6.0 }
 0x11b   : > { %v1788_v8 = vmax.f32 %v786_v36, 0.0  ;;  %3884 = vmatpush1.bf16.msra.mxu1 %v3883_v13  ;;  %3900 = vmatpush1.bf16.msra.mxu0 %v3899_v29  ;;  %v1874_v11 = vmax.f32 %v697_v5, 0.0 }
 0x11c   : > { %v1789_v16 = vmax.f32 %v788_v9, 0.0  ;;  %v791_v18 = vpop.f32.mrb[20].mxu0  ;;  %3886 = vmatprep.subr.bf16.mxu1 %v3885_v7  ;;  %v1875_v21 = vmax.f32 %v699_v10, 0.0  ;;  %v880_v54 = vpop.f32.mrb[20].mxu1  ;;  %2157 = vmatprep.mubr.f32.mxu1 %v4135_v0 }
 0x11d   : > { %v1964_v3 = vmin.f32 %v1788_v8, 6.0  ;;  %v792_v13 = vadd.f32 %v791_v18, %v4643_v50  ;;  %v793_v22 = vpop.f32.mrb[21].mxu0  ;;  %v2050_v25 = vmin.f32 %v1874_v11, 6.0  ;;  %v881_v28 = vadd.f32 %v880_v54, %v4635_v26  ;;  %v882_v30 = vpop.f32.mrb[21].mxu1 }
 0x11e   : > { %v1965_v31 = vmin.f32 %v1789_v16, 6.0  ;;  %v794_v34 = vadd.f32 %v793_v22, %v4643_v50  ;;  %v2051_v35 = vmin.f32 %v1875_v21, 6.0  ;;  %v883_v43 = vadd.f32 %v882_v30, %v4635_v26  ;;  %3773 = vmatmul.mubr.msk.f32.gmra.mrb[86].mxu1 %vm2074_vm2, %v4760_v14 }
 0x11f   : > { %v3903_v59 = vpack.c.bf16 %v1964_v3, %v1942_v60  ;;  %v1810_v7 = vmax.f32 %v792_v13, 0.0  ;;  %3888 = vmatpush1.bf16.msra.mxu1 %v3887_v1  ;;  %v3895_v38 = vpack.c.bf16 %v2050_v25, %v4755_v19  ;;  %v1724_v39 = vmax.f32 %v881_v28, 0.0  ;;  %2161 = vmatprep.mubr.f32.mxu1 %v4135_v0 }
 0x120   : > { %v3901_v42 = vpack.c.bf16 %v1965_v31, %v1943_v15  ;;  %v1811_v46 = vmax.f32 %v794_v34, 0.0  ;;  %v797_v47 = vpop.f32.mrb[22].mxu0  ;;  %v3893_v49 = vpack.c.bf16 %v2051_v35, %v2029_v20  ;;  %3890 = vmatprep.subr.bf16.mxu1 %v3889_v2  ;;  %v1725_v52 = vmax.f32 %v883_v43, 0.0  ;;  %v886_v33 = vpop.f32.mrb[22].mxu1  ;;  %v4794_v2 = vld [vmem:[%s5379_s3 + $0x18] sm:$0xf] }
 0x121   : > { %v798_v37 = vadd.f32 %v797_v47, %v4645_v51  ;;  %v799_v53 = vpop.f32.mrb[23].mxu0  ;;  %v887_v1 = vadd.f32 %v886_v33, %v4639_v44  ;;  %v888_v17 = vpop.f32.mrb[23].mxu1  ;;  %v1986_v57 = vmin.f32 %v1810_v7, 6.0  ;;  %v1900_v62 = vmin.f32 %v1724_v39, 6.0 }
 0x122   : > { %v800_v29 = vadd.f32 %v799_v53, %v4645_v51  ;;  %3902 = vmatprep.subr.bf16.mxu0 %v3901_v42  ;;  %v889_v40 = vadd.f32 %v888_v17, %v4639_v44  ;;  %3774 = vmatmul.mubr.msk.f32.gmra.mrb[88].mxu1 %vm2074_vm2, %v4780_v41  ;;  %v1987_v12 = vmin.f32 %v1811_v46, 6.0  ;;  %v1901_v4 = vmin.f32 %v1725_v52, 6.0 }
 0x123   : > { %v1832_v61 = vmax.f32 %v798_v37, 0.0  ;;  %3904 = vmatpush1.bf16.msra.mxu0 %v3903_v59  ;;  %3892 = vmatpush1.bf16.msra.mxu1 %v3891_v55  ;;  %v1746_v63 = vmax.f32 %v887_v1, 0.0 }
 0x124   : > { %v1833_v24 = vmax.f32 %v800_v29, 0.0  ;;  %v803_v36 = vpop.f32.mrb[24].mxu0  ;;  %v1747_v5 = vmax.f32 %v889_v40, 0.0  ;;  %3894 = vmatprep.subr.bf16.mxu1 %v3893_v49  ;;  %v892_v6 = vpop.f32.mrb[24].mxu1  ;;  %2165 = vmatprep.mubr.f32.mxu1 %v4135_v0 }
 0x125   : > { %v2008_v9 = vmin.f32 %v1832_v61, 6.0  ;;  %v804_v23 = vadd.f32 %v803_v36, %v4647_v27  ;;  %v805_v45 = vpop.f32.mrb[25].mxu0  ;;  %v1922_v55 = vmin.f32 %v1746_v63, 6.0  ;;  %v893_v10 = vadd.f32 %v892_v6, %v4637_v32  ;;  %v894_v60 = vpop.f32.mrb[25].mxu1 }
 0x126   : > { %v2009_v8 = vmin.f32 %v1833_v24, 6.0  ;;  %v806_v19 = vadd.f32 %v805_v45, %v4647_v27  ;;  %v1923_v11 = vmin.f32 %v1747_v5, 6.0  ;;  %v895_v15 = vadd.f32 %v894_v60, %v4637_v32  ;;  %3775 = vmatmul.mubr.msk.f32.gmra.mrb[90].mxu1 %vm2074_vm2, %v4794_v2 }
 0x127   : > { %v3907_v16 = vpack.c.bf16 %v2008_v9, %v1986_v57  ;;  %v1854_v18 = vmax.f32 %v804_v23, 0.0  ;;  %v3915_v20 = vpack.c.bf16 %v1922_v55, %v1900_v62  ;;  %3896 = vmatpush1.bf16.msra.mxu1 %v3895_v38  ;;  %v1768_v21 = vmax.f32 %v893_v10, 0.0  ;;  %2234 = vmatprep.mubr.f32.mxu1 %v4135_v0 }
 0x128   : > { %v3905_v54 = vpack.c.bf16 %v2009_v8, %v1987_v12  ;;  %v1855_v3 = vmax.f32 %v806_v19, 0.0  ;;  %v809_v13 = vpop.f32.mrb[26].mxu0  ;;  %v3913_v22 = vpack.c.bf16 %v1923_v11, %v1901_v4  ;;  %v1769_v25 = vmax.f32 %v895_v15, 0.0  ;;  %v898_v28 = vpop.f32.mrb[26].mxu1 }
 0x129   : > { %v810_v30 = vadd.f32 %v809_v13, %v4652_v58  ;;  %v811_v31 = vpop.f32.mrb[27].mxu0  ;;  %v899_v34 = vadd.f32 %v898_v28, %v4641_v48  ;;  %v900_v35 = vpop.f32.mrb[27].mxu1  ;;  %v2030_v7 = vmin.f32 %v1854_v18, 6.0  ;;  %v1944_v39 = vmin.f32 %v1768_v21, 6.0 }
 0x12a   : > { %v812_v43 = vadd.f32 %v811_v31, %v4652_v58  ;;  %3906 = vmatprep.subr.bf16.mxu0 %v3905_v54  ;;  %v901_v59 = vadd.f32 %v900_v35, %v4641_v48  ;;  %3914 = vmatprep.subr.bf16.mxu1 %v3913_v22  ;;  %v2031_v46 = vmin.f32 %v1855_v3, 6.0  ;;  %v1945_v52 = vmin.f32 %v1769_v25, 6.0 }
 0x12b   : > { %v1876_v38 = vmax.f32 %v810_v30, 0.0  ;;  %3908 = vmatpush1.bf16.msra.mxu0 %v3907_v16  ;;  %v1790_v42 = vmax.f32 %v899_v34, 0.0  ;;  %3776 = vmatmul.mubr.msk.f32.vlgmr.msra.gmra.mrb[92].mxu1 %vm2074_vm2, %v4740_v56 }
 0x12c   : > { %v1877_v47 = vmax.f32 %v812_v43, 0.0  ;;  %v993_v49 = vpop.f32.mrb[28].mxu0  ;;  %v1791_v33 = vmax.f32 %v901_v59, 0.0  ;;  %v904_v37 = vpop.f32.mrb[28].mxu1  ;;  %3916 = vmatpush1.bf16.msra.mxu1 %v3915_v20  ;;  %2240 = vmatprep.mubr.f32.mxu1 %v4135_v0 }
 0x12d   : > { %v2052_v53 = vmin.f32 %v1876_v38, 6.0  ;;  %v994_v1 = vadd.f32 %v993_v49, %v4635_v26  ;;  %v995_v17 = vpop.f32.mrb[29].mxu0  ;;  %v1966_v29 = vmin.f32 %v1790_v42, 6.0  ;;  %v905_v40 = vadd.f32 %v904_v37, %v4643_v50  ;;  %v906_v57 = vpop.f32.mrb[29].mxu1 }
 0x12e   : > { %v2053_v61 = vmin.f32 %v1877_v47, 6.0  ;;  %v996_v62 = vadd.f32 %v995_v17, %v4635_v26  ;;  %v1967_v63 = vmin.f32 %v1791_v33, 6.0  ;;  %v907_v12 = vadd.f32 %v906_v57, %v4643_v50 }
 0x12f   : > { %v3911_v24 = vpack.c.bf16 %v2052_v53, %v2030_v7  ;;  %v1726_v36 = vmax.f32 %v994_v1, 0.0  ;;  %v3919_v4 = vpack.c.bf16 %v1966_v29, %v1944_v39  ;;  %v1812_v5 = vmax.f32 %v905_v40, 0.0  ;;  %3777 = vmatmul.mubr.msk.f32.gmra.mrb[94].mxu1 %vm2074_vm2, %v4760_v14 }
 0x130   : > { %v3909_v6 = vpack.c.bf16 %v2053_v61, %v2031_v46  ;;  %v1727_v9 = vmax.f32 %v996_v62, 0.0  ;;  %v999_v23 = vpop.f32.mrb[30].mxu0  ;;  %v3917_v45 = vpack.c.bf16 %v1967_v63, %v1945_v52  ;;  %v1813_v55 = vmax.f32 %v907_v12, 0.0  ;;  %v910_v10 = vpop.f32.mrb[30].mxu1  ;;  %2246 = vmatprep.mubr.f32.mxu1 %v4135_v0 }
 0x131   : > { %v1000_v60 = vadd.f32 %v999_v23, %v4639_v44  ;;  %v1001_v8 = vpop.f32.mrb[31].mxu0  ;;  %v911_v19 = vadd.f32 %v910_v10, %v4645_v51  ;;  %v912_v11 = vpop.f32.mrb[31].mxu1  ;;  %v1902_v18 = vmin.f32 %v1726_v36, 6.0  ;;  %v1988_v21 = vmin.f32 %v1812_v5, 6.0 }
 0x132   : > { %v1002_v15 = vadd.f32 %v1001_v8, %v4639_v44  ;;  %3910 = vmatprep.subr.bf16.mxu0 %v3909_v6  ;;  %v913_v16 = vadd.f32 %v912_v11, %v4645_v51  ;;  %3918 = vmatprep.subr.bf16.mxu1 %v3917_v45  ;;  %v1903_v3 = vmin.f32 %v1727_v9, 6.0  ;;  %v1989_v22 = vmin.f32 %v1813_v55, 6.0 }
 0x133   : > { %v1748_v20 = vmax.f32 %v1000_v60, 0.0  ;;  %3912 = vmatpush1.bf16.msra.mxu0 %v3911_v24  ;;  %v1834_v54 = vmax.f32 %v911_v19, 0.0  ;;  %3920 = vmatpush1.bf16.msra.mxu1 %v3919_v4 }
 0x134   : > { %v1749_v13 = vmax.f32 %v1002_v15, 0.0  ;;  %v1005_v25 = vpop.f32.mrb[32].mxu0  ;;  %v1835_v28 = vmax.f32 %v913_v16, 0.0  ;;  %v916_v30 = vpop.f32.mrb[32].mxu1  ;;  %3778 = vmatmul.mubr.msk.f32.gmra.mrb[96].mxu1 %vm2074_vm2, %v4780_v41 }
 0x135   : > { %v1924_v31 = vmin.f32 %v1748_v20, 6.0  ;;  %v2010_v34 = vmin.f32 %v1834_v54, 6.0  ;;  %v1006_v35 = vadd.f32 %v1005_v25, %v4637_v32  ;;  %v1007_v43 = vpop.f32.mrb[33].mxu0  ;;  %v917_v59 = vadd.f32 %v916_v30, %v4647_v27  ;;  %v918_v7 = vpop.f32.mrb[33].mxu1  ;;  %2250 = vmatprep.mubr.f32.mxu1 %v4135_v0 }
 0x136   : > { %v1925_v38 = vmin.f32 %v1749_v13, 6.0  ;;  %v2011_v39 = vmin.f32 %v1835_v28, 6.0  ;;  %v1008_v42 = vadd.f32 %v1007_v43, %v4637_v32  ;;  %v919_v46 = vadd.f32 %v918_v7, %v4647_v27  ;;  %3780 = vmatmul.mubr.msk.f32.vlgmr.msra.gmra.mrb[92].mxu0 %vm2074_vm2, %v4740_v56 }
 0x137   : > { %v3931_v47 = vpack.c.bf16 %v1924_v31, %v1902_v18  ;;  %v3923_v49 = vpack.c.bf16 %v2010_v34, %v1988_v21  ;;  %v1770_v52 = vmax.f32 %v1006_v35, 0.0  ;;  %v1856_v33 = vmax.f32 %v917_v59, 0.0  ;;  %2325 = vmatprep.mubr.f32.mxu0 %v4135_v0 }
 0x138   : > { %v3929_v37 = vpack.c.bf16 %v1925_v38, %v1903_v3  ;;  %v3921_v53 = vpack.c.bf16 %v2011_v39, %v1989_v22  ;;  %v1771_v1 = vmax.f32 %v1008_v42, 0.0  ;;  %v1857_v17 = vmax.f32 %v919_v46, 0.0  ;;  %v922_v29 = vpop.f32.mrb[34].mxu1  ;;  %v1011_v40 = vpop.f32.mrb[34].mxu0  ;;  %3779 = vmatmul.mubr.msk.f32.gmra.mrb[98].mxu1 %vm2074_vm2, %v4794_v2 }
 0x139   : > { %v923_v57 = vadd.f32 %v922_v29, %v4652_v58  ;;  %v1012_v61 = vadd.f32 %v1011_v40, %v4641_v48  ;;  %v924_v62 = vpop.f32.mrb[35].mxu1  ;;  %v1013_v63 = vpop.f32.mrb[35].mxu0  ;;  %2406 = vmatprep.mubr.f32.mxu1 %v4135_v0  ;;  %v1946_v36 = vmin.f32 %v1770_v52, 6.0  ;;  %v2032_v4 = vmin.f32 %v1856_v33, 6.0 }
 0x13a   : > { %v925_v12 = vadd.f32 %v924_v62, %v4652_v58  ;;  %v1014_v24 = vadd.f32 %v1013_v63, %v4641_v48  ;;  %3930 = vmatprep.subr.bf16.mxu0 %v3929_v37  ;;  %3922 = vmatprep.subr.bf16.mxu1 %v3921_v53  ;;  %v1947_v9 = vmin.f32 %v1771_v1, 6.0  ;;  %v2033_v23 = vmin.f32 %v1857_v17, 6.0 }
 0x13b   : > { %v1878_v5 = vmax.f32 %v923_v57, 0.0  ;;  %v1792_v6 = vmax.f32 %v1012_v61, 0.0  ;;  %3932 = vmatpush1.bf16.msra.mxu0 %v3931_v47  ;;  %3924 = vmatpush1.bf16.msra.mxu1 %v3923_v49 }
 0x13c   : > { %v1879_v45 = vmax.f32 %v925_v12, 0.0  ;;  %v1793_v55 = vmax.f32 %v1014_v24, 0.0  ;;  %v1017_v10 = vpop.f32.mrb[36].mxu0  ;;  %v1106_v60 = vpop.f32.mrb[36].mxu1  ;;  %3781 = vmatmul.mubr.msk.f32.gmra.mrb[94].mxu0 %vm2074_vm2, %v4760_v14 }
 0x13d   : > { %v2054_v8 = vmin.f32 %v1878_v5, 6.0  ;;  %v1968_v19 = vmin.f32 %v1792_v6, 6.0  ;;  %v1018_v11 = vadd.f32 %v1017_v10, %v4643_v50  ;;  %v1107_v15 = vadd.f32 %v1106_v60, %v4635_v26  ;;  %v1019_v16 = vpop.f32.mrb[37].mxu0  ;;  %v1108_v18 = vpop.f32.mrb[37].mxu1  ;;  %2331 = vmatprep.mubr.f32.mxu0 %v4135_v0 }
 0x13e   : > { %v2055_v20 = vmin.f32 %v1879_v45, 6.0  ;;  %v1969_v21 = vmin.f32 %v1793_v55, 6.0  ;;  %v1020_v54 = vadd.f32 %v1019_v16, %v4643_v50  ;;  %v1109_v3 = vadd.f32 %v1108_v18, %v4635_v26 }
 0x13f   : > { %v3927_v13 = vpack.c.bf16 %v2054_v8, %v2032_v4  ;;  %v3935_v22 = vpack.c.bf16 %v1968_v19, %v1946_v36  ;;  %v1814_v25 = vmax.f32 %v1018_v11, 0.0  ;;  %v1728_v28 = vmax.f32 %v1107_v15, 0.0 }
 0x140   : > { %v3925_v30 = vpack.c.bf16 %v2055_v20, %v2033_v23  ;;  %v3933_v31 = vpack.c.bf16 %v1969_v21, %v1947_v9  ;;  %v1815_v34 = vmax.f32 %v1020_v54, 0.0  ;;  %v1729_v35 = vmax.f32 %v1109_v3, 0.0  ;;  %v1023_v43 = vpop.f32.mrb[38].mxu0  ;;  %v1112_v59 = vpop.f32.mrb[38].mxu1  ;;  %3782 = vmatmul.mubr.msk.f32.gmra.mrb[96].mxu0 %vm2074_vm2, %v4780_v41 }
 0x141   : > { %v1024_v7 = vadd.f32 %v1023_v43, %v4645_v51  ;;  %v1113_v38 = vadd.f32 %v1112_v59, %v4639_v44  ;;  %v1025_v39 = vpop.f32.mrb[39].mxu0  ;;  %v1114_v42 = vpop.f32.mrb[39].mxu1  ;;  %2337 = vmatprep.mubr.f32.mxu0 %v4135_v0  ;;  %v1990_v49 = vmin.f32 %v1814_v25, 6.0  ;;  %v1904_v52 = vmin.f32 %v1728_v28, 6.0 }
 0x142   : > { %v1026_v46 = vadd.f32 %v1025_v39, %v4645_v51  ;;  %v1115_v47 = vadd.f32 %v1114_v42, %v4639_v44  ;;  %3926 = vmatprep.subr.bf16.mxu1 %v3925_v30  ;;  %3934 = vmatprep.subr.bf16.mxu0 %v3933_v31  ;;  %v1991_v53 = vmin.f32 %v1815_v34, 6.0  ;;  %v1905_v1 = vmin.f32 %v1729_v35, 6.0 }
 0x143   : > { %v1836_v33 = vmax.f32 %v1024_v7, 0.0  ;;  %v1750_v37 = vmax.f32 %v1113_v38, 0.0  ;;  %3928 = vmatpush1.bf16.msra.mxu1 %v3927_v13  ;;  %3936 = vmatpush1.bf16.msra.mxu0 %v3935_v22 }
 0x144   : > { %v1837_v17 = vmax.f32 %v1026_v46, 0.0  ;;  %v1751_v29 = vmax.f32 %v1115_v47, 0.0  ;;  %v1029_v40 = vpop.f32.mrb[40].mxu0  ;;  %v1118_v57 = vpop.f32.mrb[40].mxu1  ;;  %3783 = vmatmul.mubr.msk.f32.gmra.mrb[98].mxu0 %vm2074_vm2, %v4794_v2 }
 0x145   : > { %v2012_v61 = vmin.f32 %v1836_v33, 6.0  ;;  %v1926_v62 = vmin.f32 %v1750_v37, 6.0  ;;  %v1030_v63 = vadd.f32 %v1029_v40, %v4647_v27  ;;  %v1119_v12 = vadd.f32 %v1118_v57, %v4637_v32  ;;  %v1031_v24 = vpop.f32.mrb[41].mxu0  ;;  %v1120_v36 = vpop.f32.mrb[41].mxu1  ;;  %2495 = vmatprep.mubr.f32.mxu0 %v4135_v0 }
 0x146   : > { %v2013_v4 = vmin.f32 %v1837_v17, 6.0  ;;  %v1927_v5 = vmin.f32 %v1751_v29, 6.0  ;;  %v1032_v6 = vadd.f32 %v1031_v24, %v4647_v27  ;;  %v1121_v9 = vadd.f32 %v1120_v36, %v4637_v32  ;;  %3784 = vmatmul.mubr.msk.f32.vlgmr.msra.gmra.mrb[100].mxu1 %vm2074_vm2, %v4740_v56 }
 0x147   : > { %v3939_v23 = vpack.c.bf16 %v2012_v61, %v1990_v49  ;;  %v3947_v45 = vpack.c.bf16 %v1926_v62, %v1904_v52  ;;  %v1858_v55 = vmax.f32 %v1030_v63, 0.0  ;;  %v1772_v10 = vmax.f32 %v1119_v12, 0.0  ;;  %2412 = vmatprep.mubr.f32.mxu1 %v4135_v0 }
 0x148   : > { %v3937_v60 = vpack.c.bf16 %v2013_v4, %v1991_v53  ;;  %v3945_v8 = vpack.c.bf16 %v1927_v5, %v1905_v1  ;;  %v1859_v19 = vmax.f32 %v1032_v6, 0.0  ;;  %v1773_v11 = vmax.f32 %v1121_v9, 0.0  ;;  %v1035_v15 = vpop.f32.mrb[42].mxu0  ;;  %v1124_v16 = vpop.f32.mrb[42].mxu1 }
 0x149   : > { %v1036_v18 = vadd.f32 %v1035_v15, %v4652_v58  ;;  %v1125_v20 = vadd.f32 %v1124_v16, %v4641_v48  ;;  %v1037_v21 = vpop.f32.mrb[43].mxu0  ;;  %v1126_v54 = vpop.f32.mrb[43].mxu1  ;;  %v2034_v22 = vmin.f32 %v1858_v55, 6.0  ;;  %v1948_v25 = vmin.f32 %v1772_v10, 6.0 }
 0x14a   : > { %v1038_v3 = vadd.f32 %v1037_v21, %v4652_v58  ;;  %v1127_v13 = vadd.f32 %v1126_v54, %v4641_v48  ;;  %3785 = vmatmul.mubr.msk.f32.gmra.mrb[102].mxu1 %vm2074_vm2, %v4760_v14  ;;  %3938 = vmatprep.subr.bf16.mxu0 %v3937_v60  ;;  %v2035_v31 = vmin.f32 %v1859_v19, 6.0  ;;  %v1949_v34 = vmin.f32 %v1773_v11, 6.0 }
 0x14b   : > { %v1880_v28 = vmax.f32 %v1036_v18, 0.0  ;;  %v1794_v30 = vmax.f32 %v1125_v20, 0.0  ;;  %3946 = vmatprep.subr.bf16.mxu1 %v3945_v8  ;;  %3940 = vmatpush1.bf16.msra.mxu0 %v3939_v23 }
 0x14c   : > { %v1881_v35 = vmax.f32 %v1038_v3, 0.0  ;;  %v1795_v43 = vmax.f32 %v1127_v13, 0.0  ;;  %3948 = vmatpush1.bf16.msra.mxu1 %v3947_v45  ;;  %v1130_v59 = vpop.f32.mrb[44].mxu1  ;;  %v1219_v7 = vpop.f32.mrb[44].mxu0  ;;  %2418 = vmatprep.mubr.f32.mxu1 %v4135_v0 }
 0x14d   : > { %v2056_v38 = vmin.f32 %v1880_v28, 6.0  ;;  %v1970_v39 = vmin.f32 %v1794_v30, 6.0  ;;  %v1131_v42 = vadd.f32 %v1130_v59, %v4643_v50  ;;  %v1220_v46 = vadd.f32 %v1219_v7, %v4635_v26  ;;  %v1132_v47 = vpop.f32.mrb[45].mxu1  ;;  %v1221_v49 = vpop.f32.mrb[45].mxu0 }
 0x14e   : > { %v2057_v52 = vmin.f32 %v1881_v35, 6.0  ;;  %v1971_v33 = vmin.f32 %v1795_v43, 6.0  ;;  %v1133_v37 = vadd.f32 %v1132_v47, %v4643_v50  ;;  %v1222_v53 = vadd.f32 %v1221_v49, %v4635_v26  ;;  %3786 = vmatmul.mubr.msk.f32.gmra.mrb[104].mxu1 %vm2074_vm2, %v4780_v41 }
 0x14f   : > { %v3943_v1 = vpack.c.bf16 %v2056_v38, %v2034_v22  ;;  %v3951_v17 = vpack.c.bf16 %v1970_v39, %v1948_v25  ;;  %v1816_v29 = vmax.f32 %v1131_v42, 0.0  ;;  %v1730_v40 = vmax.f32 %v1220_v46, 0.0  ;;  %2424 = vmatprep.mubr.f32.mxu1 %v4135_v0 }
 0x150   : > { %v3941_v57 = vpack.c.bf16 %v2057_v52, %v2035_v31  ;;  %v3949_v61 = vpack.c.bf16 %v1971_v33, %v1949_v34  ;;  %v1817_v62 = vmax.f32 %v1133_v37, 0.0  ;;  %v1731_v63 = vmax.f32 %v1222_v53, 0.0  ;;  %v1136_v12 = vpop.f32.mrb[46].mxu1  ;;  %v1225_v24 = vpop.f32.mrb[46].mxu0 }
 0x151   : > { %v1137_v36 = vadd.f32 %v1136_v12, %v4645_v51  ;;  %v1226_v4 = vadd.f32 %v1225_v24, %v4639_v44  ;;  %v1138_v5 = vpop.f32.mrb[47].mxu1  ;;  %v1227_v6 = vpop.f32.mrb[47].mxu0  ;;  %v1992_v45 = vmin.f32 %v1816_v29, 6.0  ;;  %v1906_v55 = vmin.f32 %v1730_v40, 6.0 }
 0x152   : > { %v1139_v9 = vadd.f32 %v1138_v5, %v4645_v51  ;;  %v1228_v23 = vadd.f32 %v1227_v6, %v4639_v44  ;;  %3787 = vmatmul.mubr.msk.f32.gmra.mrb[106].mxu1 %vm2074_vm2, %v4794_v2  ;;  %3942 = vmatprep.subr.bf16.mxu0 %v3941_v57  ;;  %v1993_v8 = vmin.f32 %v1817_v62, 6.0  ;;  %v1907_v19 = vmin.f32 %v1731_v63, 6.0 }
 0x153   : > { %v1838_v10 = vmax.f32 %v1137_v36, 0.0  ;;  %v1752_v60 = vmax.f32 %v1226_v4, 0.0  ;;  %3950 = vmatprep.subr.bf16.mxu1 %v3949_v61  ;;  %3944 = vmatpush1.bf16.msra.mxu0 %v3943_v1 }
 0x154   : > { %v1839_v11 = vmax.f32 %v1139_v9, 0.0  ;;  %v1753_v15 = vmax.f32 %v1228_v23, 0.0  ;;  %3952 = vmatpush1.bf16.msra.mxu1 %v3951_v17  ;;  %v1142_v16 = vpop.f32.mrb[48].mxu1  ;;  %v1231_v18 = vpop.f32.mrb[48].mxu0  ;;  %2584 = vmatprep.mubr.f32.mxu1 %v4135_v0 }
 0x155   : > { %v2014_v20 = vmin.f32 %v1838_v10, 6.0  ;;  %v1928_v21 = vmin.f32 %v1752_v60, 6.0  ;;  %v1143_v54 = vadd.f32 %v1142_v16, %v4647_v27  ;;  %v1232_v3 = vadd.f32 %v1231_v18, %v4637_v32  ;;  %v1144_v13 = vpop.f32.mrb[49].mxu1  ;;  %v1233_v22 = vpop.f32.mrb[49].mxu0 }
 0x156   : > { %v2015_v25 = vmin.f32 %v1839_v11, 6.0  ;;  %v1929_v28 = vmin.f32 %v1753_v15, 6.0  ;;  %v1145_v30 = vadd.f32 %v1144_v13, %v4647_v27  ;;  %v1234_v31 = vadd.f32 %v1233_v22, %v4637_v32  ;;  %3788 = vmatmul.mubr.msk.f32.vlgmr.msra.gmra.mrb[100].mxu0 %vm2074_vm2, %v4740_v56 }
 0x157   : > { %v3955_v34 = vpack.c.bf16 %v2014_v20, %v1992_v45  ;;  %v3963_v35 = vpack.c.bf16 %v1928_v21, %v1906_v55  ;;  %v1860_v43 = vmax.f32 %v1143_v54, 0.0  ;;  %v1774_v59 = vmax.f32 %v1232_v3, 0.0  ;;  %2501 = vmatprep.mubr.f32.mxu0 %v4135_v0 }
 0x158   : > { %v3953_v7 = vpack.c.bf16 %v2015_v25, %v1993_v8  ;;  %v3961_v38 = vpack.c.bf16 %v1929_v28, %v1907_v19  ;;  %v1861_v39 = vmax.f32 %v1145_v30, 0.0  ;;  %v1775_v42 = vmax.f32 %v1234_v31, 0.0  ;;  %v1148_v46 = vpop.f32.mrb[50].mxu1  ;;  %v1237_v47 = vpop.f32.mrb[50].mxu0 }
 0x159   : > { %v1149_v49 = vadd.f32 %v1148_v46, %v4652_v58  ;;  %v1238_v52 = vadd.f32 %v1237_v47, %v4641_v48  ;;  %v1150_v33 = vpop.f32.mrb[51].mxu1  ;;  %v1239_v37 = vpop.f32.mrb[51].mxu0  ;;  %v2036_v17 = vmin.f32 %v1860_v43, 6.0  ;;  %v1950_v29 = vmin.f32 %v1774_v59, 6.0 }
 0x15a   : > { %v1151_v53 = vadd.f32 %v1150_v33, %v4652_v58  ;;  %v1240_v1 = vadd.f32 %v1239_v37, %v4641_v48  ;;  %3789 = vmatmul.mubr.msk.f32.gmra.mrb[102].mxu0 %vm2074_vm2, %v4760_v14  ;;  %3954 = vmatprep.subr.bf16.mxu1 %v3953_v7  ;;  %v2037_v61 = vmin.f32 %v1861_v39, 6.0  ;;  %v1951_v62 = vmin.f32 %v1775_v42, 6.0 }
 0x15b   : > { %v1882_v40 = vmax.f32 %v1149_v49, 0.0  ;;  %v1796_v57 = vmax.f32 %v1238_v52, 0.0  ;;  %3962 = vmatprep.subr.bf16.mxu0 %v3961_v38  ;;  %3956 = vmatpush1.bf16.msra.mxu1 %v3955_v34 }
 0x15c   : > { %v1883_v63 = vmax.f32 %v1151_v53, 0.0  ;;  %v1797_v12 = vmax.f32 %v1240_v1, 0.0  ;;  %3964 = vmatpush1.bf16.msra.mxu0 %v3963_v35  ;;  %v1243_v24 = vpop.f32.mrb[52].mxu0  ;;  %v1332_v36 = vpop.f32.mrb[52].mxu1  ;;  %2507 = vmatprep.mubr.f32.mxu0 %v4135_v0 }
 0x15d   : > { %v2058_v4 = vmin.f32 %v1882_v40, 6.0  ;;  %v1972_v5 = vmin.f32 %v1796_v57, 6.0  ;;  %v1244_v6 = vadd.f32 %v1243_v24, %v4643_v50  ;;  %v1333_v9 = vadd.f32 %v1332_v36, %v4635_v26  ;;  %v1245_v23 = vpop.f32.mrb[53].mxu0  ;;  %v1334_v45 = vpop.f32.mrb[53].mxu1 }
 0x15e   : > { %v2059_v55 = vmin.f32 %v1883_v63, 6.0  ;;  %v1973_v10 = vmin.f32 %v1797_v12, 6.0  ;;  %v1246_v60 = vadd.f32 %v1245_v23, %v4643_v50  ;;  %v1335_v8 = vadd.f32 %v1334_v45, %v4635_v26  ;;  %3790 = vmatmul.mubr.msk.f32.gmra.mrb[104].mxu0 %vm2074_vm2, %v4780_v41 }
 0x15f   : > { %v3959_v19 = vpack.c.bf16 %v2058_v4, %v2036_v17  ;;  %v3967_v11 = vpack.c.bf16 %v1972_v5, %v1950_v29  ;;  %v1818_v15 = vmax.f32 %v1244_v6, 0.0  ;;  %v1732_v16 = vmax.f32 %v1333_v9, 0.0  ;;  %2513 = vmatprep.mubr.f32.mxu0 %v4135_v0 }
 0x160   : > { %v3957_v18 = vpack.c.bf16 %v2059_v55, %v2037_v61  ;;  %v3965_v20 = vpack.c.bf16 %v1973_v10, %v1951_v62  ;;  %v1819_v21 = vmax.f32 %v1246_v60, 0.0  ;;  %v1733_v54 = vmax.f32 %v1335_v8, 0.0  ;;  %v1249_v3 = vpop.f32.mrb[54].mxu0  ;;  %v1338_v13 = vpop.f32.mrb[54].mxu1 }
 0x161   : > { %v1250_v22 = vadd.f32 %v1249_v3, %v4645_v51  ;;  %v1339_v25 = vadd.f32 %v1338_v13, %v4639_v44  ;;  %v1251_v28 = vpop.f32.mrb[55].mxu0  ;;  %v1340_v30 = vpop.f32.mrb[55].mxu1  ;;  %v1994_v35 = vmin.f32 %v1818_v15, 6.0  ;;  %v1908_v43 = vmin.f32 %v1732_v16, 6.0 }
 0x162   : > { %v1252_v31 = vadd.f32 %v1251_v28, %v4645_v51  ;;  %v1341_v34 = vadd.f32 %v1340_v30, %v4639_v44  ;;  %3791 = vmatmul.mubr.msk.f32.gmra.mrb[106].mxu0 %vm2074_vm2, %v4794_v2  ;;  %3958 = vmatprep.subr.bf16.mxu1 %v3957_v18  ;;  %v1995_v38 = vmin.f32 %v1819_v21, 6.0  ;;  %v1909_v39 = vmin.f32 %v1733_v54, 6.0 }
 0x163   : > { %v1840_v59 = vmax.f32 %v1250_v22, 0.0  ;;  %v1754_v7 = vmax.f32 %v1339_v25, 0.0  ;;  %3966 = vmatprep.subr.bf16.mxu0 %v3965_v20  ;;  %3960 = vmatpush1.bf16.msra.mxu1 %v3959_v19 }
 0x164   : > { %v1841_v42 = vmax.f32 %v1252_v31, 0.0  ;;  %v1755_v46 = vmax.f32 %v1341_v34, 0.0  ;;  %3968 = vmatpush1.bf16.msra.mxu0 %v3967_v11  ;;  %v1255_v47 = vpop.f32.mrb[56].mxu0  ;;  %v1344_v49 = vpop.f32.mrb[56].mxu1  ;;  %2673 = vmatprep.mubr.f32.mxu0 %v4135_v0 }
 0x165   : > { %v2016_v52 = vmin.f32 %v1840_v59, 6.0  ;;  %v1930_v33 = vmin.f32 %v1754_v7, 6.0  ;;  %v1256_v37 = vadd.f32 %v1255_v47, %v4647_v27  ;;  %v1345_v53 = vadd.f32 %v1344_v49, %v4637_v32  ;;  %v1257_v1 = vpop.f32.mrb[57].mxu0  ;;  %v1346_v17 = vpop.f32.mrb[57].mxu1 }
 0x166   : > { %v2017_v29 = vmin.f32 %v1841_v42, 6.0  ;;  %v1931_v40 = vmin.f32 %v1755_v46, 6.0  ;;  %v1258_v57 = vadd.f32 %v1257_v1, %v4647_v27  ;;  %v1347_v61 = vadd.f32 %v1346_v17, %v4637_v32  ;;  %3792 = vmatmul.mubr.msk.f32.vlgmr.msra.gmra.mrb[108].mxu1 %vm2074_vm2, %v4740_v56 }
 0x167   : > { %v3971_v62 = vpack.c.bf16 %v2016_v52, %v1994_v35  ;;  %v3979_v63 = vpack.c.bf16 %v1930_v33, %v1908_v43  ;;  %v1862_v12 = vmax.f32 %v1256_v37, 0.0  ;;  %v1776_v24 = vmax.f32 %v1345_v53, 0.0  ;;  %2590 = vmatprep.mubr.f32.mxu1 %v4135_v0 }
 0x168   : > { %v3969_v36 = vpack.c.bf16 %v2017_v29, %v1995_v38  ;;  %v3977_v4 = vpack.c.bf16 %v1931_v40, %v1909_v39  ;;  %v1863_v5 = vmax.f32 %v1258_v57, 0.0  ;;  %v1777_v6 = vmax.f32 %v1347_v61, 0.0  ;;  %v1261_v9 = vpop.f32.mrb[58].mxu0  ;;  %v1350_v23 = vpop.f32.mrb[58].mxu1 }
 0x169   : > { %v1262_v45 = vadd.f32 %v1261_v9, %v4652_v58  ;;  %v1351_v55 = vadd.f32 %v1350_v23, %v4641_v48  ;;  %v1263_v10 = vpop.f32.mrb[59].mxu0  ;;  %v1352_v60 = vpop.f32.mrb[59].mxu1  ;;  %v2038_v19 = vmin.f32 %v1862_v12, 6.0  ;;  %v1952_v11 = vmin.f32 %v1776_v24, 6.0 }
 0x16a   : > { %v1264_v56 = vadd.f32 %v1263_v10, %v4652_v58  ;;  %v1353_v8 = vadd.f32 %v1352_v60, %v4641_v48  ;;  %3793 = vmatmul.mubr.msk.f32.gmra.mrb[110].mxu1 %vm2074_vm2, %v4760_v14  ;;  %3970 = vmatprep.subr.bf16.mxu0 %v3969_v36  ;;  %v2039_v18 = vmin.f32 %v1863_v5, 6.0  ;;  %v1953_v20 = vmin.f32 %v1777_v6, 6.0 }
 0x16b   : > { %v1884_v15 = vmax.f32 %v1262_v45, 0.0  ;;  %v1798_v16 = vmax.f32 %v1351_v55, 0.0  ;;  %3978 = vmatprep.subr.bf16.mxu1 %v3977_v4  ;;  %3972 = vmatpush1.bf16.msra.mxu0 %v3971_v62 }
 0x16c   : > { %v1885_v21 = vmax.f32 %v1264_v56, 0.0  ;;  %v1799_v54 = vmax.f32 %v1353_v8, 0.0  ;;  %3980 = vmatpush1.bf16.msra.mxu1 %v3979_v63  ;;  %v1356_v3 = vpop.f32.mrb[60].mxu1  ;;  %v1445_v13 = vpop.f32.mrb[60].mxu0  ;;  %2596 = vmatprep.mubr.f32.mxu1 %v4135_v0 }
 0x16d   : > { %v2060_v22 = vmin.f32 %v1884_v15, 6.0  ;;  %v1974_v25 = vmin.f32 %v1798_v16, 6.0  ;;  %v1357_v14 = vadd.f32 %v1356_v3, %v4643_v50  ;;  %v1446_v28 = vadd.f32 %v1445_v13, %v4635_v26  ;;  %v1358_v30 = vpop.f32.mrb[61].mxu1  ;;  %v1447_v31 = vpop.f32.mrb[61].mxu0 }
 0x16e   : > { %v2061_v34 = vmin.f32 %v1885_v21, 6.0  ;;  %v1975_v35 = vmin.f32 %v1799_v54, 6.0  ;;  %v1359_v43 = vadd.f32 %v1358_v30, %v4643_v50  ;;  %v1448_v59 = vadd.f32 %v1447_v31, %v4635_v26  ;;  %3794 = vmatmul.mubr.msk.f32.gmra.mrb[112].mxu1 %vm2074_vm2, %v4780_v41 }
 0x16f   : > { %v3975_v7 = vpack.c.bf16 %v2060_v22, %v2038_v19  ;;  %v3983_v38 = vpack.c.bf16 %v1974_v25, %v1952_v11  ;;  %v1820_v39 = vmax.f32 %v1357_v14, 0.0  ;;  %v1734_v42 = vmax.f32 %v1446_v28, 0.0  ;;  %2602 = vmatprep.mubr.f32.mxu1 %v4135_v0  ;;  %v4947_v11 = vld [vmem:[%s5379_s3] sm:$0xff] }
 0x170   : > { %v3973_v46 = vpack.c.bf16 %v2061_v34, %v2039_v18  ;;  %v3981_v47 = vpack.c.bf16 %v1975_v35, %v1953_v20  ;;  %v1821_v49 = vmax.f32 %v1359_v43, 0.0  ;;  %v1735_v52 = vmax.f32 %v1448_v59, 0.0  ;;  %v1362_v33 = vpop.f32.mrb[62].mxu1  ;;  %v1451_v37 = vpop.f32.mrb[62].mxu0  ;;  %v4959_v43 = vld [vmem:[%s5379_s3 + $0x8] sm:$0xff] }
 0x171   : > { %v1363_v53 = vadd.f32 %v1362_v33, %v4645_v51  ;;  %v1452_v1 = vadd.f32 %v1451_v37, %v4639_v44  ;;  %v1364_v17 = vpop.f32.mrb[63].mxu1  ;;  %v1453_v29 = vpop.f32.mrb[63].mxu0  ;;  %v1996_v57 = vmin.f32 %v1820_v39, 6.0  ;;  %v1910_v61 = vmin.f32 %v1734_v42, 6.0 }
 0x172   : > { %v1365_v41 = vadd.f32 %v1364_v17, %v4645_v51  ;;  %v1454_v40 = vadd.f32 %v1453_v29, %v4639_v44  ;;  %3795 = vmatmul.mubr.msk.f32.gmra.mrb[114].mxu1 %vm2074_vm2, %v4794_v2  ;;  %3974 = vmatprep.subr.bf16.mxu0 %v3973_v46  ;;  %v1997_v12 = vmin.f32 %v1821_v49, 6.0  ;;  %v1911_v24 = vmin.f32 %v1735_v52, 6.0 }
 0x173   : > { %v1842_v62 = vmax.f32 %v1363_v53, 0.0  ;;  %v1756_v63 = vmax.f32 %v1452_v1, 0.0  ;;  %3982 = vmatprep.subr.bf16.mxu1 %v3981_v47  ;;  %3976 = vmatpush1.bf16.msra.mxu0 %v3975_v7 }
 0x174   : > { %v1843_v36 = vmax.f32 %v1365_v41, 0.0  ;;  %v1757_v4 = vmax.f32 %v1454_v40, 0.0  ;;  %3984 = vmatpush1.bf16.msra.mxu1 %v3983_v38  ;;  %v1368_v5 = vpop.f32.mrb[64].mxu1  ;;  %v1457_v6 = vpop.f32.mrb[64].mxu0  ;;  %2762 = vmatprep.mubr.f32.mxu1 %v4135_v0 }
 0x175   : > { %v2018_v9 = vmin.f32 %v1842_v62, 6.0  ;;  %v1932_v23 = vmin.f32 %v1756_v63, 6.0  ;;  %v1369_v2 = vadd.f32 %v1368_v5, %v4647_v27  ;;  %v1458_v45 = vadd.f32 %v1457_v6, %v4637_v32  ;;  %v1370_v55 = vpop.f32.mrb[65].mxu1  ;;  %v1459_v10 = vpop.f32.mrb[65].mxu0  ;;  %v4971_v63 = vld [vmem:[%s5379_s3 + $0x10] sm:$0xff] }
 0x176   : > { %v2019_v60 = vmin.f32 %v1843_v36, 6.0  ;;  %v1933_v56 = vmin.f32 %v1757_v4, 6.0  ;;  %v1371_v8 = vadd.f32 %v1370_v55, %v4647_v27  ;;  %v1460_v19 = vadd.f32 %v1459_v10, %v4637_v32  ;;  %3796 = vmatmul.mubr.msk.f32.vlgmr.msra.gmra.mrb[108].mxu0 %vm2074_vm2, %v4947_v11 }
 0x177   : > { %v3987_v15 = vpack.c.bf16 %v2018_v9, %v1996_v57  ;;  %v3995_v16 = vpack.c.bf16 %v1932_v23, %v1910_v61  ;;  %v1864_v18 = vmax.f32 %v1369_v2, 0.0  ;;  %v1778_v20 = vmax.f32 %v1458_v45, 0.0  ;;  %2679 = vmatprep.mubr.f32.mxu0 %v4135_v0 }
 0x178   : > { %v3985_v21 = vpack.c.bf16 %v2019_v60, %v1997_v12  ;;  %v3993_v54 = vpack.c.bf16 %v1933_v56, %v1911_v24  ;;  %v1865_v3 = vmax.f32 %v1371_v8, 0.0  ;;  %v1779_v13 = vmax.f32 %v1460_v19, 0.0  ;;  %v1374_v22 = vpop.f32.mrb[66].mxu1  ;;  %v1463_v25 = vpop.f32.mrb[66].mxu0 }
 0x179   : > { %v1375_v14 = vadd.f32 %v1374_v22, %v4652_v58  ;;  %v1464_v28 = vadd.f32 %v1463_v25, %v4641_v48  ;;  %v1376_v30 = vpop.f32.mrb[67].mxu1  ;;  %v1465_v31 = vpop.f32.mrb[67].mxu0  ;;  %v2040_v59 = vmin.f32 %v1864_v18, 6.0  ;;  %v1954_v7 = vmin.f32 %v1778_v20, 6.0 }
 0x17a   : > { %v1377_v34 = vadd.f32 %v1376_v30, %v4652_v58  ;;  %v1466_v35 = vadd.f32 %v1465_v31, %v4641_v48  ;;  %3797 = vmatmul.mubr.msk.f32.gmra.mrb[110].mxu0 %vm2074_vm2, %v4959_v43  ;;  %3986 = vmatprep.subr.bf16.mxu1 %v3985_v21  ;;  %v2041_v42 = vmin.f32 %v1865_v3, 6.0  ;;  %v1955_v46 = vmin.f32 %v1779_v13, 6.0 }
 0x17b   : > { %v1886_v38 = vmax.f32 %v1375_v14, 0.0  ;;  %v1800_v39 = vmax.f32 %v1464_v28, 0.0  ;;  %3994 = vmatprep.subr.bf16.mxu0 %v3993_v54  ;;  %3988 = vmatpush1.bf16.msra.mxu1 %v3987_v15  ;;  %v4983_v15 = vld [vmem:[%s5379_s3 + $0x18] sm:$0xf] }
 0x17c   : > { %v1887_v47 = vmax.f32 %v1377_v34, 0.0  ;;  %v1801_v49 = vmax.f32 %v1466_v35, 0.0  ;;  %3996 = vmatpush1.bf16.msra.mxu0 %v3995_v16  ;;  %v1469_v52 = vpop.f32.mrb[68].mxu0  ;;  %v1558_v33 = vpop.f32.mrb[68].mxu1  ;;  %2685 = vmatprep.mubr.f32.mxu0 %v4135_v0 }
 0x17d   : > { %v2062_v37 = vmin.f32 %v1886_v38, 6.0  ;;  %v1976_v53 = vmin.f32 %v1800_v39, 6.0  ;;  %v1470_v1 = vadd.f32 %v1469_v52, %v4643_v50  ;;  %v1559_v17 = vadd.f32 %v1558_v33, %v4635_v26  ;;  %v1471_v29 = vpop.f32.mrb[69].mxu0  ;;  %v1560_v41 = vpop.f32.mrb[69].mxu1 }
 0x17e   : > { %v2063_v40 = vmin.f32 %v1887_v47, 6.0  ;;  %v1977_v57 = vmin.f32 %v1801_v49, 6.0  ;;  %v1472_v61 = vadd.f32 %v1471_v29, %v4643_v50  ;;  %v1561_v62 = vadd.f32 %v1560_v41, %v4635_v26  ;;  %3798 = vmatmul.mubr.msk.f32.gmra.mrb[112].mxu0 %vm2074_vm2, %v4971_v63 }
 0x17f   : > { %v3991_v12 = vpack.c.bf16 %v2062_v37, %v2040_v59  ;;  %v3999_v24 = vpack.c.bf16 %v1976_v53, %v1954_v7  ;;  %v1822_v36 = vmax.f32 %v1470_v1, 0.0  ;;  %v1736_v4 = vmax.f32 %v1559_v17, 0.0  ;;  %2691 = vmatprep.mubr.f32.mxu0 %v4135_v0 }
 0x180   : > { %v3989_v5 = vpack.c.bf16 %v2063_v40, %v2041_v42  ;;  %v3997_v6 = vpack.c.bf16 %v1977_v57, %v1955_v46  ;;  %v1823_v9 = vmax.f32 %v1472_v61, 0.0  ;;  %v1737_v23 = vmax.f32 %v1561_v62, 0.0  ;;  %v1475_v2 = vpop.f32.mrb[70].mxu0  ;;  %v1564_v45 = vpop.f32.mrb[70].mxu1 }
 0x181   : > { %v1476_v55 = vadd.f32 %v1475_v2, %v4645_v51  ;;  %v1565_v10 = vadd.f32 %v1564_v45, %v4639_v44  ;;  %v1477_v60 = vpop.f32.mrb[71].mxu0  ;;  %v1566_v56 = vpop.f32.mrb[71].mxu1  ;;  %v1998_v16 = vmin.f32 %v1822_v36, 6.0  ;;  %v1912_v18 = vmin.f32 %v1736_v4, 6.0 }
 0x182   : > { %v1478_v8 = vadd.f32 %v1477_v60, %v4645_v51  ;;  %v1567_v19 = vadd.f32 %v1566_v56, %v4639_v44  ;;  %3799 = vmatmul.mubr.msk.f32.gmra.mrb[114].mxu0 %vm2074_vm2, %v4983_v15  ;;  %3990 = vmatprep.subr.bf16.mxu1 %v3989_v5  ;;  %v1999_v54 = vmin.f32 %v1823_v9, 6.0  ;;  %v1913_v3 = vmin.f32 %v1737_v23, 6.0 }
 0x183   : > { %v1844_v20 = vmax.f32 %v1476_v55, 0.0  ;;  %v1758_v21 = vmax.f32 %v1565_v10, 0.0  ;;  %3998 = vmatprep.subr.bf16.mxu0 %v3997_v6  ;;  %3992 = vmatpush1.bf16.msra.mxu1 %v3991_v12 }
 0x184   : > { %v1845_v13 = vmax.f32 %v1478_v8, 0.0  ;;  %v1759_v22 = vmax.f32 %v1567_v19, 0.0  ;;  %4000 = vmatpush1.bf16.msra.mxu0 %v3999_v24  ;;  %v1481_v25 = vpop.f32.mrb[72].mxu0  ;;  %v1570_v14 = vpop.f32.mrb[72].mxu1  ;;  %2851 = vmatprep.mubr.f32.mxu0 %v4135_v0 }
 0x185   : > { %v2020_v28 = vmin.f32 %v1844_v20, 6.0  ;;  %v1934_v30 = vmin.f32 %v1758_v21, 6.0  ;;  %v1482_v31 = vadd.f32 %v1481_v25, %v4647_v27  ;;  %v1571_v34 = vadd.f32 %v1570_v14, %v4637_v32  ;;  %v1483_v35 = vpop.f32.mrb[73].mxu0  ;;  %v1572_v59 = vpop.f32.mrb[73].mxu1 }
 0x186   : > { %v2021_v7 = vmin.f32 %v1845_v13, 6.0  ;;  %v1935_v38 = vmin.f32 %v1759_v22, 6.0  ;;  %v1484_v39 = vadd.f32 %v1483_v35, %v4647_v27  ;;  %v1573_v42 = vadd.f32 %v1572_v59, %v4637_v32  ;;  %3800 = vmatmul.mubr.msk.f32.vlgmr.msra.gmra.mrb[116].mxu1 %vm2074_vm2, %v4947_v11 }
 0x187   : > { %v4003_v46 = vpack.c.bf16 %v2020_v28, %v1998_v16  ;;  %v4011_v47 = vpack.c.bf16 %v1934_v30, %v1912_v18  ;;  %v1866_v49 = vmax.f32 %v1482_v31, 0.0  ;;  %v1780_v52 = vmax.f32 %v1571_v34, 0.0  ;;  %2768 = vmatprep.mubr.f32.mxu1 %v4135_v0 }
 0x188   : > { %v4001_v33 = vpack.c.bf16 %v2021_v7, %v1999_v54  ;;  %v4009_v37 = vpack.c.bf16 %v1935_v38, %v1913_v3  ;;  %v1867_v53 = vmax.f32 %v1484_v39, 0.0  ;;  %v1781_v1 = vmax.f32 %v1573_v42, 0.0  ;;  %v1487_v17 = vpop.f32.mrb[74].mxu0  ;;  %v1576_v29 = vpop.f32.mrb[74].mxu1 }
 0x189   : > { %v1488_v41 = vadd.f32 %v1487_v17, %v4652_v58  ;;  %v1577_v40 = vadd.f32 %v1576_v29, %v4641_v48  ;;  %v1489_v57 = vpop.f32.mrb[75].mxu0  ;;  %v1578_v61 = vpop.f32.mrb[75].mxu1  ;;  %v2042_v24 = vmin.f32 %v1866_v49, 6.0  ;;  %v1956_v36 = vmin.f32 %v1780_v52, 6.0 }
 0x18a   : > { %v1490_v62 = vadd.f32 %v1489_v57, %v4652_v58  ;;  %v1579_v12 = vadd.f32 %v1578_v61, %v4641_v48  ;;  %3801 = vmatmul.mubr.msk.f32.gmra.mrb[118].mxu1 %vm2074_vm2, %v4959_v43  ;;  %4002 = vmatprep.subr.bf16.mxu0 %v4001_v33  ;;  %v2043_v6 = vmin.f32 %v1867_v53, 6.0  ;;  %v1957_v9 = vmin.f32 %v1781_v1, 6.0 }
 0x18b   : > { %v1888_v4 = vmax.f32 %v1488_v41, 0.0  ;;  %v1802_v5 = vmax.f32 %v1577_v40, 0.0  ;;  %4010 = vmatprep.subr.bf16.mxu1 %v4009_v37  ;;  %4004 = vmatpush1.bf16.msra.mxu0 %v4003_v46 }
 0x18c   : > { %v1889_v23 = vmax.f32 %v1490_v62, 0.0  ;;  %v1803_v2 = vmax.f32 %v1579_v12, 0.0  ;;  %4012 = vmatpush1.bf16.msra.mxu1 %v4011_v47  ;;  %v1582_v45 = vpop.f32.mrb[76].mxu1  ;;  %v1671_v55 = vpop.f32.mrb[76].mxu0  ;;  %2774 = vmatprep.mubr.f32.mxu1 %v4135_v0 }
 0x18d   : > { %v2064_v10 = vmin.f32 %v1888_v4, 6.0  ;;  %v1978_v60 = vmin.f32 %v1802_v5, 6.0  ;;  %v1583_v56 = vadd.f32 %v1582_v45, %v4643_v50  ;;  %v1672_v8 = vadd.f32 %v1671_v55, %v4635_v26  ;;  %v1584_v19 = vpop.f32.mrb[77].mxu1  ;;  %v1673_v16 = vpop.f32.mrb[77].mxu0 }
 0x18e   : > { %v2065_v18 = vmin.f32 %v1889_v23, 6.0  ;;  %v1979_v20 = vmin.f32 %v1803_v2, 6.0  ;;  %v1585_v21 = vadd.f32 %v1584_v19, %v4643_v50  ;;  %v1674_v54 = vadd.f32 %v1673_v16, %v4635_v26  ;;  %3802 = vmatmul.mubr.msk.f32.gmra.mrb[120].mxu1 %vm2074_vm2, %v4971_v63 }
 0x18f   : > { %v4007_v3 = vpack.c.bf16 %v2064_v10, %v2042_v24  ;;  %v4015_v13 = vpack.c.bf16 %v1978_v60, %v1956_v36  ;;  %v1824_v22 = vmax.f32 %v1583_v56, 0.0  ;;  %v1738_v25 = vmax.f32 %v1672_v8, 0.0  ;;  %2780 = vmatprep.mubr.f32.mxu1 %v4135_v0 }
 0x190   : > { %v4005_v14 = vpack.c.bf16 %v2065_v18, %v2043_v6  ;;  %v4013_v28 = vpack.c.bf16 %v1979_v20, %v1957_v9  ;;  %v1825_v30 = vmax.f32 %v1585_v21, 0.0  ;;  %v1739_v31 = vmax.f32 %v1674_v54, 0.0  ;;  %v1588_v34 = vpop.f32.mrb[78].mxu1  ;;  %v1677_v35 = vpop.f32.mrb[78].mxu0 }
 0x191   : > { %v1589_v59 = vadd.f32 %v1588_v34, %v4645_v51  ;;  %v1678_v7 = vadd.f32 %v1677_v35, %v4639_v44  ;;  %v1590_v26 = vpop.f32.mrb[79].mxu1  ;;  %v1679_v38 = vpop.f32.mrb[79].mxu0  ;;  %v2000_v46 = vmin.f32 %v1824_v22, 6.0  ;;  %v1914_v47 = vmin.f32 %v1738_v25, 6.0 }
 0x192   : > { %v1591_v39 = vadd.f32 %v1590_v26, %v4645_v51  ;;  %v1680_v42 = vadd.f32 %v1679_v38, %v4639_v44  ;;  %3803 = vmatmul.mubr.msk.f32.gmra.mrb[122].mxu1 %vm2074_vm2, %v4983_v15  ;;  %4006 = vmatprep.subr.bf16.mxu0 %v4005_v14  ;;  %v2001_v33 = vmin.f32 %v1825_v30, 6.0  ;;  %v1915_v37 = vmin.f32 %v1739_v31, 6.0 }
 0x193   : > { %v1846_v49 = vmax.f32 %v1589_v59, 0.0  ;;  %v1760_v52 = vmax.f32 %v1678_v7, 0.0  ;;  %4014 = vmatprep.subr.bf16.mxu1 %v4013_v28  ;;  %4008 = vmatpush1.bf16.msra.mxu0 %v4007_v3 }
 0x194   : > { %v1847_v53 = vmax.f32 %v1591_v39, 0.0  ;;  %v1761_v1 = vmax.f32 %v1680_v42, 0.0  ;;  %4016 = vmatpush1.bf16.msra.mxu1 %v4015_v13  ;;  %v1594_v17 = vpop.f32.mrb[80].mxu1  ;;  %v1683_v29 = vpop.f32.mrb[80].mxu0  ;;  %2939 = vmatprep.mubr.f32.mxu1 %v4135_v0 }
 0x195   : > { %v2022_v44 = vmin.f32 %v1846_v49, 6.0  ;;  %v1936_v41 = vmin.f32 %v1760_v52, 6.0  ;;  %v1595_v40 = vadd.f32 %v1594_v17, %v4647_v27  ;;  %v1684_v57 = vadd.f32 %v1683_v29, %v4637_v32  ;;  %v1596_v61 = vpop.f32.mrb[81].mxu1  ;;  %v1685_v62 = vpop.f32.mrb[81].mxu0 }
 0x196   : > { %v2023_v12 = vmin.f32 %v1847_v53, 6.0  ;;  %v1937_v24 = vmin.f32 %v1761_v1, 6.0  ;;  %v1597_v36 = vadd.f32 %v1596_v61, %v4647_v27  ;;  %v1686_v4 = vadd.f32 %v1685_v62, %v4637_v32  ;;  %3804 = vmatmul.mubr.msk.f32.vlgmr.msra.gmra.mrb[116].mxu0 %vm2074_vm2, %v4947_v11 }
 0x197   : > { %v4019_v5 = vpack.c.bf16 %v2022_v44, %v2000_v46  ;;  %v4027_v6 = vpack.c.bf16 %v1936_v41, %v1914_v47  ;;  %2856 = vmatprep.mubr.f32.mxu0 %v4135_v0  ;;  %v1868_v2 = vmax.f32 %v1595_v40, 0.0  ;;  %v1782_v45 = vmax.f32 %v1684_v57, 0.0 }
 0x198   : > { %v4017_v9 = vpack.c.bf16 %v2023_v12, %v2001_v33  ;;  %v4025_v23 = vpack.c.bf16 %v1937_v24, %v1915_v37  ;;  %v1600_v55 = vpop.f32.mrb[82].mxu1  ;;  %v1689_v10 = vpop.f32.mrb[82].mxu0  ;;  %v1869_v60 = vmax.f32 %v1597_v36, 0.0  ;;  %v1783_v16 = vmax.f32 %v1686_v4, 0.0 }
 0x199   : > { %v1601_v56 = vadd.f32 %v1600_v55, %v4652_v58  ;;  %v1690_v8 = vadd.f32 %v1689_v10, %v4641_v48  ;;  %v1602_v19 = vpop.f32.mrb[83].mxu1  ;;  %v1691_v32 = vpop.f32.mrb[83].mxu0  ;;  %v2044_v3 = vmin.f32 %v1868_v2, 6.0  ;;  %v1958_v13 = vmin.f32 %v1782_v45, 6.0 }
 0x19a   : > { %v1603_v18 = vadd.f32 %v1602_v19, %v4652_v58  ;;  %v1692_v20 = vadd.f32 %v1691_v32, %v4641_v48  ;;  %3805 = vmatmul.mubr.msk.f32.gmra.mrb[118].mxu0 %vm2074_vm2, %v4959_v43  ;;  %4018 = vmatprep.subr.bf16.mxu1 %v4017_v9  ;;  %v2045_v28 = vmin.f32 %v1869_v60, 6.0  ;;  %v1959_v35 = vmin.f32 %v1783_v16, 6.0 }
 0x19b   : > { %v1890_v21 = vmax.f32 %v1601_v56, 0.0  ;;  %v1804_v54 = vmax.f32 %v1690_v8, 0.0  ;;  %4026 = vmatprep.subr.bf16.mxu0 %v4025_v23  ;;  %4020 = vmatpush1.bf16.msra.mxu1 %v4019_v5 }
 0x19c   : > { %v1891_v22 = vmax.f32 %v1603_v18, 0.0  ;;  %v1805_v25 = vmax.f32 %v1692_v20, 0.0  ;;  %4028 = vmatpush1.bf16.msra.mxu0 %v4027_v6  ;;  %v1695_v14 = vpop.f32.mrb[84].mxu0  ;;  %2862 = vmatprep.mubr.f32.mxu0 %v4135_v0 }
 0x19d   : > { %v2066_v30 = vmin.f32 %v1890_v21, 6.0  ;;  %v1980_v31 = vmin.f32 %v1804_v54, 6.0  ;;  %v1696_v48 = vadd.f32 %v1695_v14, %v4643_v50  ;;  %v1697_v34 = vpop.f32.mrb[85].mxu0 }
 0x19e   : > { %v2067_v59 = vmin.f32 %v1891_v22, 6.0  ;;  %v1981_v7 = vmin.f32 %v1805_v25, 6.0  ;;  %v1698_v26 = vadd.f32 %v1697_v34, %v4643_v50  ;;  %3806 = vmatmul.mubr.msk.f32.gmra.mrb[120].mxu0 %vm2074_vm2, %v4971_v63 }
 0x19f   : > { %v4023_v38 = vpack.c.bf16 %v2066_v30, %v2044_v3  ;;  %v4031_v39 = vpack.c.bf16 %v1980_v31, %v1958_v13  ;;  %2868 = vmatprep.mubr.f32.mxu0 %v4135_v0  ;;  %v1826_v49 = vmax.f32 %v1696_v48, 0.0 }
 0x1a0   : > { %v4021_v42 = vpack.c.bf16 %v2067_v59, %v2045_v28  ;;  %v4029_v46 = vpack.c.bf16 %v1981_v7, %v1959_v35  ;;  %v1701_v47 = vpop.f32.mrb[86].mxu0  ;;  %v1827_v37 = vmax.f32 %v1698_v26, 0.0 }
 0x1a1   : > { %v1702_v52 = vadd.f32 %v1701_v47, %v4645_v51  ;;  %v1703_v33 = vpop.f32.mrb[87].mxu0  ;;  %v2002_v29 = vmin.f32 %v1826_v49, 6.0 }
 0x1a2   : > { %v1704_v53 = vadd.f32 %v1703_v33, %v4645_v51  ;;  %3807 = vmatmul.mubr.msk.f32.gmra.mrb[122].mxu0 %vm2074_vm2, %v4983_v15  ;;  %4022 = vmatprep.subr.bf16.mxu1 %v4021_v42  ;;  %v2003_v57 = vmin.f32 %v1827_v37, 6.0 }
 0x1a3   : > { %v1848_v50 = vmax.f32 %v1702_v52, 0.0  ;;  %4030 = vmatprep.subr.bf16.mxu0 %v4029_v46  ;;  %4024 = vmatpush1.bf16.msra.mxu1 %v4023_v38 }
 0x1a4   : > { %v1849_v1 = vmax.f32 %v1704_v53, 0.0  ;;  %4032 = vmatpush1.bf16.msra.mxu0 %v4031_v39  ;;  %v1707_v17 = vpop.f32.mrb[88].mxu0  ;;  %3025 = vmatprep.mubr.f32.mxu0 %v4135_v0 }
 0x1a5   : > { %v2024_v44 = vmin.f32 %v1848_v50, 6.0  ;;  %v1708_v41 = vadd.f32 %v1707_v17, %v4647_v27  ;;  %v1709_v40 = vpop.f32.mrb[89].mxu0 }
 0x1a6   : > { %v2025_v61 = vmin.f32 %v1849_v1, 6.0  ;;  %v1710_v51 = vadd.f32 %v1709_v40, %v4647_v27  ;;  %3808 = vmatmul.mubr.msk.f32.vlgmr.msra.gmra.mrb[124].mxu1 %vm2074_vm2, %v4947_v11 }
 0x1a7   : > { %v4035_v62 = vpack.c.bf16 %v2024_v44, %v2002_v29  ;;  %2943 = vmatprep.mubr.f32.mxu1 %v4135_v0  ;;  %v1870_v36 = vmax.f32 %v1708_v41, 0.0 }
 0x1a8   : > { %v4033_v12 = vpack.c.bf16 %v2025_v61, %v2003_v57  ;;  %v1713_v24 = vpop.f32.mrb[90].mxu0  ;;  %v1871_v6 = vmax.f32 %v1710_v51, 0.0 }
 0x1a9   : > { %v1714_v4 = vadd.f32 %v1713_v24, %v4652_v58  ;;  %v1715_v5 = vpop.f32.mrb[91].mxu0  ;;  %v2046_v2 = vmin.f32 %v1870_v36, 6.0 }
 0x1aa   : > { %v1716_v9 = vadd.f32 %v1715_v5, %v4652_v58  ;;  %3809 = vmatmul.mubr.msk.f32.gmra.mrb[126].mxu1 %vm2074_vm2, %v4959_v43  ;;  %4034 = vmatprep.subr.bf16.mxu0 %v4033_v12  ;;  %v2047_v55 = vmin.f32 %v1871_v6, 6.0 }
 0x1ab   : > { %v1892_v27 = vmax.f32 %v1714_v4, 0.0  ;;  %4036 = vmatpush1.bf16.msra.mxu0 %v4035_v62  ;;  %2948 = vmatprep.mubr.f32.mxu1 %v4135_v0 }
 0x1ac   : > { %v1893_v23 = vmax.f32 %v1716_v9, 0.0 }
 0x1ad   : > { %v2068_v45 = vmin.f32 %v1892_v27, 6.0 }
 0x1ae   : > { %v2069_v10 = vmin.f32 %v1893_v23, 6.0  ;;  %3810 = vmatmul.mubr.msk.f32.gmra.mrb[128].mxu1 %vm2074_vm2, %v4971_v63 }
 0x1af   : > { %v4039_v60 = vpack.c.bf16 %v2068_v45, %v2046_v2  ;;  %2954 = vmatprep.mubr.f32.mxu1 %v4135_v0 }
 0x1b0   : > { %v4037_v58 = vpack.c.bf16 %v2069_v10, %v2047_v55 }
 0x1b2   : > { %3811 = vmatmul.mubr.msk.f32.gmra.mrb[130].mxu1 %vm2074_vm2, %v4983_v15  ;;  %4038 = vmatprep.subr.bf16.mxu0 %v4037_v58 }
 0x1b3   : > { %4040 = vmatpush1.bf16.msra.mxu0 %v4039_v60 }
 0x1b6   : > { %3812 = vmatmul.mubr.msk.f32.vlgmr.msra.gmra.mrb[124].mxu0 %vm2074_vm2, %v4947_v11  ;;  %v3045_v11 = vlaneseq }
 0x1b7   : > { %3029 = vmatprep.mubr.f32.mxu0 %v4135_v0 }
 0x1b8   : > { %v5067_v56 = vand.u32 127, %v3045_v11 }
 0x1ba   : > { %3813 = vmatmul.mubr.msk.f32.gmra.mrb[126].mxu0 %vm2074_vm2, %v4959_v43  ;;  %v3047_v43 = vadd.s32 128, %v5067_v56  ;;  %v3048_v3 = vadd.s32 256, %v5067_v56  ;;  %v3049_v22 = vadd.s32 384, %v5067_v56  ;;  %v3050_v38 = vadd.s32 512, %v5067_v56 }
 0x1bb   : > { %3033 = vmatprep.mubr.f32.mxu0 %v4135_v0  ;;  %v3051_v46 = vadd.s32 640, %v5067_v56  ;;  %v3052_v2 = vadd.s32 768, %v5067_v56  ;;  %v3053_v10 = vadd.s32 896, %v5067_v56 }
 0x1be   : > { %3814 = vmatmul.mubr.msk.f32.gmra.mrb[128].mxu0 %vm2074_vm2, %v4971_v63  ;;  %v5070_v63 = vstv %s3817_s10 }
 0x1bf   : > { %3038 = vmatprep.mubr.f32.mxu0 %v4135_v0  ;;  %v5072_v0 = vstv %s3818_s11  ;;  %vm3078_vm3 = vcmp.ge.s32.totalorder %v5067_v56, %v5070_v63  ;;  %vm3079_vm5 = vcmp.ge.s32.totalorder %v3047_v43, %v5070_v63  ;;  %vm3080_vm9 = vcmp.ge.s32.totalorder %v3048_v3, %v5070_v63 }
 0x1c0   : > { %vm3101_vm4 = vcmp.lt.s32.totalorder %v5067_v56, %v5072_v0  ;;  %vm3102_vm6 = vcmp.lt.s32.totalorder %v3047_v43, %v5072_v0  ;;  %vm3103_vm10 = vcmp.lt.s32.totalorder %v3048_v3, %v5072_v0  ;;  %vm3081_vm12 = vcmp.ge.s32.totalorder %v3049_v22, %v5070_v63 }
 0x1c1   : > { %vm3123_vm7 = vmand %vm3078_vm3, %vm3101_vm4  ;;  %vm3104_vm13 = vcmp.lt.s32.totalorder %v3049_v22, %v5072_v0  ;;  %vm3082_vm15 = vcmp.ge.s32.totalorder %v3050_v38, %v5070_v63  ;;  %vm3105_vm0 = vcmp.lt.s32.totalorder %v3050_v38, %v5072_v0  ;;  %vm3083_vm1 = vcmp.ge.s32.totalorder %v3051_v46, %v5070_v63 }
 0x1c2   : > { %3815 = vmatmul.mubr.msk.f32.gmra.mrb[130].mxu0 %vm2074_vm2, %v4983_v15  ;;  %vm3124_vm8 = vmand %vm3079_vm5, %vm3102_vm6  ;;  %vm3106_vm2 = vcmp.lt.s32.totalorder %v3051_v46, %v5072_v0  ;;  %vm3084_vm5 = vcmp.ge.s32.totalorder %v3052_v2, %v5070_v63  ;;  %vm3107_vm6 = vcmp.lt.s32.totalorder %v3052_v2, %v5072_v0  ;;  %v3058_v2 = vadd.s32 1536, %v5067_v56 }
 0x1c3   : > { %vm5084_vm11 = vmand %vm3080_vm9, %vm3103_vm10 }
 0x1c4   : > { %vm3126_vm14 = vmand %vm3081_vm12, %vm3104_vm13 }
 0x1c5   : > { %vm5100_vm3 = vmand %vm3082_vm15, %vm3105_vm0 }
 0x1c6   : > { %vm5106_vm4 = vmand %vm3083_vm1, %vm3106_vm2 }
 0x1c7   : > { %vm5126_vm9 = vmand %vm3084_vm5, %vm3107_vm6 }
 0x1ed   : > { %v2153_v15 = vpop.f32.mrb[84].mxu1 }
 0x1ee   : > { %v2155_v8 = vpop.f32.mrb[85].mxu1  ;;  %v3189_v19 = vsel %vm3123_vm7, %v2153_v15, 0.0  ;;  %vm3085_vm7 = vcmp.ge.s32.totalorder %v3053_v10, %v5070_v63 }
 0x1ef   : > { %v3190_v32 = vsel %vm3124_vm8, %v2155_v8, 0.0  ;;  %vm3108_vm8 = vcmp.lt.s32.totalorder %v3053_v10, %v5072_v0 }
 0x1f0   : > { %v3272_v16 = vrot.slane %v3190_v32, 4  ;;  %vm5132_vm10 = vmand %vm3085_vm7, %vm3108_vm8  ;;  %vm3090_vm7 = vcmp.ge.s32.totalorder %v3058_v2, %v5070_v63  ;;  %vm3113_vm8 = vcmp.lt.s32.totalorder %v3058_v2, %v5072_v0 }
 0x1f1   : > { %v2159_v18 = vpop.f32.mrb[86].mxu1 }
 0x1f2   : > { %v2160_v20 = vpop.f32.mrb[87].mxu1  ;;  %v3304_v21 = vadd.f32 %v3272_v16, %v3189_v19 }
 0x1f5   : > { %v2163_v54 = vpop.f32.mrb[88].mxu1 }
 0x1f6   : > { %v2164_v13 = vpop.f32.mrb[89].mxu1 }
 0x1f9   : > { %v2167_v25 = vpop.f32.mrb[90].mxu1 }
 0x1fa   : > { %v2168_v14 = vpop.f32.mrb[91].mxu1 }
 0x1fe   : > { %v2236_v30 = vpop.f32.mrb[92].mxu1 }
 0x1ff   : > { %v3191_v31 = vsel %vm5084_vm11, %v2236_v30, 0.0  ;;  %v2238_v48 = vpop.f32.mrb[93].mxu1 }
 0x200   : > { %v3273_v34 = vrot.slane %v3191_v31, 4  ;;  %v3192_v35 = vsel %vm3126_vm14, %v2238_v48, 0.0 }
 0x201   : > { %v3274_v59 = vrot.slane %v3192_v35, 4 }
 0x202   : > { %v2242_v7 = vpop.f32.mrb[94].mxu1  ;;  %v3305_v26 = vadd.f32 %v3273_v34, %v3190_v32 }
 0x203   : > { %v3206_v39 = vsel %vm5084_vm11, %v2242_v7, 0.0  ;;  %v2244_v42 = vpop.f32.mrb[95].mxu1  ;;  %v3306_v47 = vadd.f32 %v3274_v59, %v3191_v31 }
 0x204   : > { %v3320_v49 = vadd.f32 %v3304_v21, %v3206_v39  ;;  %v3207_v52 = vsel %vm3126_vm14, %v2244_v42, 0.0 }
 0x205   : > { %v3321_v33 = vadd.f32 %v3305_v26, %v3207_v52  ;;  %v3352_v37 = vrot.slane %v3207_v52, 4 }
 0x207   : > { %v2248_v53 = vpop.f32.mrb[96].mxu1  ;;  %v3384_v50 = vadd.f32 %v3352_v37, %v3320_v49 }
 0x208   : > { %v2249_v1 = vpop.f32.mrb[97].mxu1 }
 0x209   : > { %v2321_v17 = vpop.f32.mrb[92].mxu0 }
 0x20a   : > { %v3193_v44 = vsel %vm5100_vm3, %v2321_v17, 0.0  ;;  %v2323_v41 = vpop.f32.mrb[93].mxu0  ;;  %v3055_v17 = vadd.s32 1152, %v5067_v56 }
 0x20b   : > { %v2252_v57 = vpop.f32.mrb[98].mxu1  ;;  %v3275_v61 = vrot.slane %v3193_v44, 4  ;;  %v3194_v51 = vsel %vm5106_vm4, %v2323_v41, 0.0 }
 0x20c   : > { %v2253_v62 = vpop.f32.mrb[99].mxu1  ;;  %v3276_v12 = vrot.slane %v3194_v51, 4  ;;  %vm3087_vm13 = vcmp.ge.s32.totalorder %v3055_v17, %v5070_v63  ;;  %vm3110_vm14 = vcmp.lt.s32.totalorder %v3055_v17, %v5072_v0 }
 0x20d   : > { %v3307_v24 = vadd.f32 %v3275_v61, %v3192_v35  ;;  %vm5168_vm0 = vmand %vm3087_vm13, %vm3110_vm14 }
 0x20e   : > { %v3308_v36 = vadd.f32 %v3276_v12, %v3193_v44 }
 0x20f   : > { %v2327_v4 = vpop.f32.mrb[94].mxu0 }
 0x210   : > { %v3208_v5 = vsel %vm5100_vm3, %v2327_v4, 0.0  ;;  %v2329_v6 = vpop.f32.mrb[95].mxu0 }
 0x211   : > { %v3322_v9 = vadd.f32 %v3306_v47, %v3208_v5  ;;  %v3353_v27 = vrot.slane %v3208_v5, 4  ;;  %v3209_v23 = vsel %vm5106_vm4, %v2329_v6, 0.0 }
 0x212   : > { %v3323_v45 = vadd.f32 %v3307_v24, %v3209_v23  ;;  %v3354_v55 = vrot.slane %v3209_v23, 4  ;;  %v5158_v24 = vpop.permute.xlu0 %3499 }
 0x213   : > { %v2333_v60 = vpop.f32.mrb[96].mxu0  ;;  %v3385_v58 = vadd.f32 %v3353_v27, %v3321_v33  ;;  %v3054_v33 = vadd.s32 1024, %v5067_v56 }
 0x214   : > { %v3223_v11 = vsel %vm5100_vm3, %v2333_v60, 0.0  ;;  %v2335_v43 = vpop.f32.mrb[97].mxu0  ;;  %v3386_v15 = vadd.f32 %v3354_v55, %v3322_v9 }
 0x215   : > { %v3400_v8 = vadd.f32 %v3384_v50, %v3223_v11  ;;  %v3224_v19 = vsel %vm5106_vm4, %v2335_v43, 0.0  ;;  %vm3086_vm11 = vcmp.ge.s32.totalorder %v3054_v33, %v5070_v63  ;;  %vm3109_vm12 = vcmp.lt.s32.totalorder %v3054_v33, %v5072_v0 }
 0x216   : > { %v3401_v32 = vadd.f32 %v3385_v58, %v3224_v19  ;;  %v3432_v16 = vrot.slane %v3224_v19, 4  ;;  %vm5161_vm15 = vmand %vm3086_vm11, %vm3109_vm12 }
 0x217   : > { %v2339_v18 = vpop.f32.mrb[98].mxu0  ;;  %vm5232_vm11 = vmand %vm3090_vm7, %vm3113_vm8 }
 0x218   : > { %v3464_v20 = vadd.f32 %v3432_v16, %v3400_v8  ;;  %v2340_v21 = vpop.f32.mrb[99].mxu0 }
 0x219   : > { %v2408_v54 = vpop.f32.mrb[100].mxu1 }
 0x21a   : > { %v3195_v13 = vsel %vm5126_vm9, %v2408_v54, 0.0  ;;  %v2410_v22 = vpop.f32.mrb[101].mxu1 }
 0x21b   : > { %v3277_v14 = vrot.slane %v3195_v13, 4  ;;  %v3196_v28 = vsel %vm5132_vm10, %v2410_v22, 0.0  ;;  %v3056_v22 = vadd.s32 1280, %v5067_v56 }
 0x21c   : > { %v3278_v30 = vrot.slane %v3196_v28, 4 }
 0x21d   : > { %v2414_v31 = vpop.f32.mrb[102].mxu1  ;;  %v3309_v48 = vadd.f32 %v3277_v14, %v3194_v51  ;;  %vm3088_vm1 = vcmp.ge.s32.totalorder %v3056_v22, %v5070_v63  ;;  %vm3111_vm2 = vcmp.lt.s32.totalorder %v3056_v22, %v5072_v0 }
 0x21e   : > { %v3210_v34 = vsel %vm5126_vm9, %v2414_v31, 0.0  ;;  %v2416_v35 = vpop.f32.mrb[103].mxu1  ;;  %v3310_v59 = vadd.f32 %v3278_v30, %v3195_v13  ;;  %v3057_v31 = vadd.s32 1408, %v5067_v56  ;;  %vm5199_vm5 = vmand %vm3088_vm1, %vm3111_vm2 }
 0x21f   : > { %v3324_v7 = vadd.f32 %v3308_v36, %v3210_v34  ;;  %v3355_v26 = vrot.slane %v3210_v34, 4  ;;  %v3211_v38 = vsel %vm5132_vm10, %v2416_v35, 0.0 }
 0x220   : > { %v3325_v39 = vadd.f32 %v3309_v48, %v3211_v38  ;;  %v3356_v42 = vrot.slane %v3211_v38, 4  ;;  %vm3089_vm3 = vcmp.ge.s32.totalorder %v3057_v31, %v5070_v63  ;;  %vm3112_vm4 = vcmp.lt.s32.totalorder %v3057_v31, %v5072_v0 }
 0x221   : > { %v2420_v46 = vpop.f32.mrb[104].mxu1  ;;  %v3387_v47 = vadd.f32 %v3355_v26, %v3323_v45  ;;  %vm5206_vm6 = vmand %vm3089_vm3, %vm3112_vm4 }
 0x222   : > { %v3225_v49 = vsel %vm5126_vm9, %v2420_v46, 0.0  ;;  %v2422_v52 = vpop.f32.mrb[105].mxu1  ;;  %v3388_v37 = vadd.f32 %v3356_v42, %v3324_v7 }
 0x223   : > { %v3402_v53 = vadd.f32 %v3386_v15, %v3225_v49  ;;  %v3433_v50 = vrot.slane %v3225_v49, 4  ;;  %v3226_v1 = vsel %vm5132_vm10, %v2422_v52, 0.0 }
 0x224   : > { %v3403_v29 = vadd.f32 %v3387_v47, %v3226_v1  ;;  %v3434_v44 = vrot.slane %v3226_v1, 4 }
 0x225   : > { %v2426_v41 = vpop.f32.mrb[106].mxu1  ;;  %v3465_v40 = vadd.f32 %v3433_v50, %v3401_v32  ;;  %v3060_v50 = vadd.s32 1792, %v5067_v56 }
 0x226   : > { %v3240_v57 = vsel %vm5126_vm9, %v2426_v41, 0.0  ;;  %v2428_v61 = vpop.f32.mrb[107].mxu1  ;;  %v3466_v51 = vadd.f32 %v3434_v44, %v3402_v53 }
 0x227   : > { %v3480_v62 = vadd.f32 %v3464_v20, %v3240_v57  ;;  %v3241_v12 = vsel %vm5132_vm10, %v2428_v61, 0.0  ;;  %vm3092_vm13 = vcmp.ge.s32.totalorder %v3060_v50, %v5070_v63  ;;  %vm3115_vm14 = vcmp.lt.s32.totalorder %v3060_v50, %v5072_v0 }
 0x228   : > { %v3481_v36 = vadd.f32 %v3465_v40, %v3241_v12  ;;  %vm5265_vm1 = vmand %vm3092_vm13, %vm3115_vm14 }
 0x229   : > { %v3502_v4 = vadd.f32 %v5158_v24, %v3480_v62  ;;  %v2497_v5 = vpop.f32.mrb[100].mxu0 }
 0x22a   : > { %v3503_v9 = vadd.f32 %v5158_v24, %v3481_v36  ;;  %v3197_v27 = vsel %vm5161_vm15, %v2497_v5, 0.0  ;;  %v2499_v23 = vpop.f32.mrb[101].mxu0 }
 0x22b   : > { %v3279_v45 = vrot.slane %v3197_v27, 4  ;;  %v3198_v55 = vsel %vm5168_vm0, %v2499_v23, 0.0 }
 0x22c   : > { %v3534_v10 = vcombine.low %v3502_v4, %v3503_v9  ;;  %v3280_v60 = vrot.slane %v3198_v55, 4 }
 0x22d   : > { %v2503_v58 = vpop.f32.mrb[102].mxu0  ;;  %v3311_v11 = vadd.f32 %v3279_v45, %v3196_v28 }
 0x22e   : > { %3550 = vst [vmem:[%s5175_s16] sm:$0xff] %v3534_v10  ;;  %v3212_v43 = vsel %vm5161_vm15, %v2503_v58, 0.0  ;;  %v2505_v15 = vpop.f32.mrb[103].mxu0  ;;  %v3312_v8 = vadd.f32 %v3280_v60, %v3197_v27  ;;  %v3059_v58 = vadd.s32 1664, %v5067_v56 }
 0x22f   : > { %v3326_v19 = vadd.f32 %v3310_v59, %v3212_v43  ;;  %v3357_v32 = vrot.slane %v3212_v43, 4  ;;  %v3213_v16 = vsel %vm5168_vm0, %v2505_v15, 0.0 }
 0x230   : > { %v3327_v18 = vadd.f32 %v3311_v11, %v3213_v16  ;;  %v3358_v20 = vrot.slane %v3213_v16, 4  ;;  %vm3091_vm9 = vcmp.ge.s32.totalorder %v3059_v58, %v5070_v63  ;;  %vm3114_vm10 = vcmp.lt.s32.totalorder %v3059_v58, %v5072_v0 }
 0x231   : > { %v2509_v21 = vpop.f32.mrb[104].mxu0  ;;  %v3389_v54 = vadd.f32 %v3357_v32, %v3325_v39  ;;  %vm5239_vm12 = vmand %vm3091_vm9, %vm3114_vm10 }
 0x232   : > { %v3227_v3 = vsel %vm5161_vm15, %v2509_v21, 0.0  ;;  %v2511_v13 = vpop.f32.mrb[105].mxu0  ;;  %v3390_v25 = vadd.f32 %v3358_v20, %v3326_v19 }
 0x233   : > { %v3404_v14 = vadd.f32 %v3388_v37, %v3227_v3  ;;  %v3435_v28 = vrot.slane %v3227_v3, 4  ;;  %v3228_v30 = vsel %vm5168_vm0, %v2511_v13, 0.0 }
 0x234   : > { %v3405_v48 = vadd.f32 %v3389_v54, %v3228_v30  ;;  %v3436_v34 = vrot.slane %v3228_v30, 4 }
 0x235   : > { %v2515_v35 = vpop.f32.mrb[106].mxu0  ;;  %v3467_v59 = vadd.f32 %v3435_v28, %v3403_v29  ;;  %v3062_v28 = vadd.s32 2048, %v5067_v56 }
 0x236   : > { %v3242_v7 = vsel %vm5161_vm15, %v2515_v35, 0.0  ;;  %v2517_v26 = vpop.f32.mrb[107].mxu0  ;;  %v3468_v38 = vadd.f32 %v3436_v34, %v3404_v14 }
 0x237   : > { %v3482_v39 = vadd.f32 %v3466_v51, %v3242_v7  ;;  %v3243_v42 = vsel %vm5168_vm0, %v2517_v26, 0.0  ;;  %vm3094_vm3 = vcmp.ge.s32.totalorder %v3062_v28, %v5070_v63  ;;  %vm3117_vm4 = vcmp.lt.s32.totalorder %v3062_v28, %v5072_v0 }
 0x238   : > { %v3483_v46 = vadd.f32 %v3467_v59, %v3243_v42 }
 0x239   : > { %v3504_v47 = vadd.f32 %v5158_v24, %v3482_v39  ;;  %v2586_v49 = vpop.f32.mrb[108].mxu1 }
 0x23a   : > { %v3505_v33 = vadd.f32 %v5158_v24, %v3483_v46  ;;  %v3199_v37 = vsel %vm5199_vm5, %v2586_v49, 0.0  ;;  %v2588_v53 = vpop.f32.mrb[109].mxu1 }
 0x23b   : > { %v3281_v1 = vrot.slane %v3199_v37, 4  ;;  %v3200_v17 = vsel %vm5206_vm6, %v2588_v53, 0.0 }
 0x23c   : > { %v3535_v29 = vcombine.low %v3504_v47, %v3505_v33  ;;  %v3282_v44 = vrot.slane %v3200_v17, 4 }
 0x23d   : > { %v2592_v41 = vpop.f32.mrb[110].mxu1  ;;  %v3313_v40 = vadd.f32 %v3281_v1, %v3198_v55 }
 0x23e   : > { %3551 = vst [vmem:[%s5175_s16 + $0x8] sm:$0xff] %v3535_v29  ;;  %v3214_v57 = vsel %vm5199_vm5, %v2592_v41, 0.0  ;;  %v2594_v61 = vpop.f32.mrb[111].mxu1  ;;  %v3314_v51 = vadd.f32 %v3282_v44, %v3199_v37  ;;  %v3061_v41 = vadd.s32 1920, %v5067_v56 }
 0x23f   : > { %v3328_v62 = vadd.f32 %v3312_v8, %v3214_v57  ;;  %v3359_v12 = vrot.slane %v3214_v57, 4  ;;  %v3215_v36 = vsel %vm5206_vm6, %v2594_v61, 0.0 }
 0x240   : > { %v3329_v4 = vadd.f32 %v3313_v40, %v3215_v36  ;;  %v3360_v5 = vrot.slane %v3215_v36, 4  ;;  %vm3093_vm15 = vcmp.ge.s32.totalorder %v3061_v41, %v5070_v63  ;;  %vm3116_vm0 = vcmp.lt.s32.totalorder %v3061_v41, %v5072_v0 }
 0x241   : > { %v2598_v6 = vpop.f32.mrb[112].mxu1  ;;  %v3391_v9 = vadd.f32 %v3359_v12, %v3327_v18  ;;  %vm5272_vm2 = vmand %vm3093_vm15, %vm3116_vm0 }
 0x242   : > { %v3229_v27 = vsel %vm5199_vm5, %v2598_v6, 0.0  ;;  %v2600_v23 = vpop.f32.mrb[113].mxu1  ;;  %v3392_v45 = vadd.f32 %v3360_v5, %v3328_v62 }
 0x243   : > { %v3406_v55 = vadd.f32 %v3390_v25, %v3229_v27  ;;  %v3437_v10 = vrot.slane %v3229_v27, 4  ;;  %v3230_v60 = vsel %vm5206_vm6, %v2600_v23, 0.0 }
 0x244   : > { %v3407_v11 = vadd.f32 %v3391_v9, %v3230_v60  ;;  %v3438_v43 = vrot.slane %v3230_v60, 4 }
 0x245   : > { %v2604_v15 = vpop.f32.mrb[114].mxu1  ;;  %v3469_v8 = vadd.f32 %v3437_v10, %v3405_v48 }
 0x246   : > { %v3244_v19 = vsel %vm5199_vm5, %v2604_v15, 0.0  ;;  %v2606_v32 = vpop.f32.mrb[115].mxu1  ;;  %v3470_v16 = vadd.f32 %v3438_v43, %v3406_v55  ;;  %vm5296_vm5 = vmand %vm3094_vm3, %vm3117_vm4 }
 0x247   : > { %v3484_v18 = vadd.f32 %v3468_v38, %v3244_v19  ;;  %v3245_v20 = vsel %vm5206_vm6, %v2606_v32, 0.0 }
 0x248   : > { %v3485_v21 = vadd.f32 %v3469_v8, %v3245_v20 }
 0x249   : > { %v3506_v54 = vadd.f32 %v5158_v24, %v3484_v18  ;;  %v2675_v3 = vpop.f32.mrb[108].mxu0 }
 0x24a   : > { %v3507_v22 = vadd.f32 %v5158_v24, %v3485_v21  ;;  %v3201_v25 = vsel %vm5232_vm11, %v2675_v3, 0.0  ;;  %v2677_v14 = vpop.f32.mrb[109].mxu0 }
 0x24b   : > { %v3283_v30 = vrot.slane %v3201_v25, 4  ;;  %v3202_v31 = vsel %vm5239_vm12, %v2677_v14, 0.0 }
 0x24c   : > { %v3536_v48 = vcombine.low %v3506_v54, %v3507_v22  ;;  %v3284_v34 = vrot.slane %v3202_v31, 4 }
 0x24d   : > { %v2681_v35 = vpop.f32.mrb[110].mxu0  ;;  %v3315_v59 = vadd.f32 %v3283_v30, %v3200_v17 }
 0x24e   : > { %3552 = vst [vmem:[%s5175_s16 + $0x10] sm:$0xff] %v3536_v48  ;;  %v3216_v7 = vsel %vm5232_vm11, %v2681_v35, 0.0  ;;  %v2683_v26 = vpop.f32.mrb[111].mxu0  ;;  %v3316_v38 = vadd.f32 %v3284_v34, %v3201_v25 }
 0x24f   : > { %v3330_v39 = vadd.f32 %v3314_v51, %v3216_v7  ;;  %v3361_v42 = vrot.slane %v3216_v7, 4  ;;  %v3217_v46 = vsel %vm5239_vm12, %v2683_v26, 0.0 }
 0x250   : > { %v3331_v47 = vadd.f32 %v3315_v59, %v3217_v46  ;;  %v3362_v49 = vrot.slane %v3217_v46, 4 }
 0x251   : > { %v2687_v52 = vpop.f32.mrb[112].mxu0  ;;  %v3393_v33 = vadd.f32 %v3361_v42, %v3329_v4 }
 0x252   : > { %v3231_v37 = vsel %vm5232_vm11, %v2687_v52, 0.0  ;;  %v2689_v53 = vpop.f32.mrb[113].mxu0  ;;  %v3394_v1 = vadd.f32 %v3362_v49, %v3330_v39  ;;  %v3063_v49 = vadd.s32 2176, %v5067_v56 }
 0x253   : > { %v3408_v17 = vadd.f32 %v3392_v45, %v3231_v37  ;;  %v3439_v29 = vrot.slane %v3231_v37, 4  ;;  %v3232_v44 = vsel %vm5239_vm12, %v2689_v53, 0.0 }
 0x254   : > { %v3409_v40 = vadd.f32 %v3393_v33, %v3232_v44  ;;  %v3440_v57 = vrot.slane %v3232_v44, 4  ;;  %vm3095_vm6 = vcmp.ge.s32.totalorder %v3063_v49, %v5070_v63  ;;  %vm3118_vm7 = vcmp.lt.s32.totalorder %v3063_v49, %v5072_v0 }
 0x255   : > { %v2693_v61 = vpop.f32.mrb[114].mxu0  ;;  %v3471_v51 = vadd.f32 %v3439_v29, %v3407_v11  ;;  %vm5308_vm8 = vmand %vm3095_vm6, %vm3118_vm7 }
 0x256   : > { %v3246_v62 = vsel %vm5232_vm11, %v2693_v61, 0.0  ;;  %v2695_v12 = vpop.f32.mrb[115].mxu0  ;;  %v3472_v36 = vadd.f32 %v3440_v57, %v3408_v17 }
 0x257   : > { %v3486_v4 = vadd.f32 %v3470_v16, %v3246_v62  ;;  %v3247_v5 = vsel %vm5239_vm12, %v2695_v12, 0.0 }
 0x258   : > { %v3487_v6 = vadd.f32 %v3471_v51, %v3247_v5 }
 0x259   : > { %v3508_v9 = vadd.f32 %v5158_v24, %v3486_v4  ;;  %v2764_v27 = vpop.f32.mrb[116].mxu1 }
 0x25a   : > { %v3509_v2 = vadd.f32 %v5158_v24, %v3487_v6  ;;  %v3203_v45 = vsel %vm5265_vm1, %v2764_v27, 0.0  ;;  %v2766_v55 = vpop.f32.mrb[117].mxu1 }
 0x25b   : > { %v3285_v60 = vrot.slane %v3203_v45, 4  ;;  %v3204_v58 = vsel %vm5272_vm2, %v2766_v55, 0.0 }
 0x25c   : > { %v3537_v11 = vcombine.low %v3508_v9, %v3509_v2  ;;  %v3286_v43 = vrot.slane %v3204_v58, 4 }
 0x25d   : > { %v2770_v15 = vpop.f32.mrb[118].mxu1  ;;  %v3317_v8 = vadd.f32 %v3285_v60, %v3202_v31 }
 0x25e   : > { %3553 = vst [vmem:[%s5175_s16 + $0x18] sm:$0xff] %v3537_v11  ;;  %v3218_v19 = vsel %vm5265_vm1, %v2770_v15, 0.0  ;;  %v2772_v32 = vpop.f32.mrb[119].mxu1  ;;  %v3318_v16 = vadd.f32 %v3286_v43, %v3203_v45  ;;  %v3064_v11 = vadd.s32 2304, %v5067_v56 }
 0x25f   : > { %v3332_v18 = vadd.f32 %v3316_v38, %v3218_v19  ;;  %v3363_v20 = vrot.slane %v3218_v19, 4  ;;  %v3219_v21 = vsel %vm5272_vm2, %v2772_v32, 0.0 }
 0x260   : > { %v3333_v54 = vadd.f32 %v3317_v8, %v3219_v21  ;;  %v3364_v3 = vrot.slane %v3219_v21, 4  ;;  %vm3096_vm9 = vcmp.ge.s32.totalorder %v3064_v11, %v5070_v63  ;;  %vm3119_vm10 = vcmp.lt.s32.totalorder %v3064_v11, %v5072_v0 }
 0x261   : > { %v2776_v13 = vpop.f32.mrb[120].mxu1  ;;  %v3395_v22 = vadd.f32 %v3363_v20, %v3331_v47  ;;  %vm5328_vm11 = vmand %vm3096_vm9, %vm3119_vm10 }
 0x262   : > { %v3233_v25 = vsel %vm5265_vm1, %v2776_v13, 0.0  ;;  %v2778_v14 = vpop.f32.mrb[121].mxu1  ;;  %v3396_v30 = vadd.f32 %v3364_v3, %v3332_v18  ;;  %v3065_v3 = vadd.s32 2432, %v5067_v56 }
 0x263   : > { %v3410_v31 = vadd.f32 %v3394_v1, %v3233_v25  ;;  %v3441_v48 = vrot.slane %v3233_v25, 4  ;;  %v3234_v34 = vsel %vm5272_vm2, %v2778_v14, 0.0 }
 0x264   : > { %v3411_v35 = vadd.f32 %v3395_v22, %v3234_v34  ;;  %v3442_v59 = vrot.slane %v3234_v34, 4  ;;  %vm3097_vm12 = vcmp.ge.s32.totalorder %v3065_v3, %v5070_v63  ;;  %vm3120_vm13 = vcmp.lt.s32.totalorder %v3065_v3, %v5072_v0 }
 0x265   : > { %v2782_v7 = vpop.f32.mrb[122].mxu1  ;;  %v3473_v26 = vadd.f32 %v3441_v48, %v3409_v40  ;;  %vm5337_vm14 = vmand %vm3097_vm12, %vm3120_vm13 }
 0x266   : > { %v3248_v38 = vsel %vm5265_vm1, %v2782_v7, 0.0  ;;  %v2784_v39 = vpop.f32.mrb[123].mxu1  ;;  %v3474_v42 = vadd.f32 %v3442_v59, %v3410_v31 }
 0x267   : > { %v3488_v46 = vadd.f32 %v3472_v36, %v3248_v38  ;;  %v3249_v47 = vsel %vm5272_vm2, %v2784_v39, 0.0 }
 0x268   : > { %v3489_v52 = vadd.f32 %v3473_v26, %v3249_v47 }
 0x269   : > { %v3510_v33 = vadd.f32 %v5158_v24, %v3488_v46  ;;  %v2853_v37 = vpop.f32.mrb[116].mxu0 }
 0x26a   : > { %v3511_v50 = vadd.f32 %v5158_v24, %v3489_v52  ;;  %v3205_v1 = vsel %vm5296_vm5, %v2853_v37, 0.0  ;;  %v2855_v17 = vpop.f32.mrb[117].mxu0 }
 0x26b   : > { %v3287_v29 = vrot.slane %v3205_v1, 4 }
 0x26c   : > { %v3538_v44 = vcombine.low %v3510_v33, %v3511_v50 }
 0x26d   : > { %v3319_v41 = vadd.f32 %v3287_v29, %v3204_v58  ;;  %v2858_v40 = vpop.f32.mrb[118].mxu0  ;;  %v3066_v29 = vadd.s32 2560, %v5067_v56 }
 0x26e   : > { %3554 = vst [vmem:[%s5175_s16 + $0x20] sm:$0xff] %v3538_v44  ;;  %v3220_v57 = vsel %vm5296_vm5, %v2858_v40, 0.0  ;;  %v2860_v61 = vpop.f32.mrb[119].mxu0 }
 0x26f   : > { %v3334_v62 = vadd.f32 %v3318_v16, %v3220_v57  ;;  %v3365_v12 = vrot.slane %v3220_v57, 4  ;;  %v3221_v36 = vsel %vm5308_vm8, %v2860_v61, 0.0  ;;  %vm3098_vm15 = vcmp.ge.s32.totalorder %v3066_v29, %v5070_v63 }
 0x270   : > { %v3335_v4 = vadd.f32 %v3319_v41, %v3221_v36  ;;  %v3366_v5 = vrot.slane %v3221_v36, 4  ;;  %vm3121_vm0 = vcmp.lt.s32.totalorder %v3066_v29, %v5072_v0 }
 0x271   : > { %v2864_v6 = vpop.f32.mrb[120].mxu0  ;;  %v3397_v9 = vadd.f32 %v3365_v12, %v3333_v54  ;;  %vm3143_vm1 = vmand %vm3098_vm15, %vm3121_vm0 }
 0x272   : > { %v3235_v27 = vsel %vm5296_vm5, %v2864_v6, 0.0  ;;  %v2866_v23 = vpop.f32.mrb[121].mxu0  ;;  %v3398_v2 = vadd.f32 %v3366_v5, %v3334_v62  ;;  %v3067_v62 = vadd.s32 2688, %v5067_v56 }
 0x273   : > { %v3412_v45 = vadd.f32 %v3396_v30, %v3235_v27  ;;  %v3443_v55 = vrot.slane %v3235_v27, 4  ;;  %v3236_v10 = vsel %vm5308_vm8, %v2866_v23, 0.0 }
 0x274   : > { %v3413_v60 = vadd.f32 %v3397_v9, %v3236_v10  ;;  %v3444_v58 = vrot.slane %v3236_v10, 4  ;;  %vm3099_vm2 = vcmp.ge.s32.totalorder %v3067_v62, %v5070_v63  ;;  %vm3122_vm3 = vcmp.lt.s32.totalorder %v3067_v62, %v5072_v0 }
 0x275   : > { %v2870_v43 = vpop.f32.mrb[122].mxu0  ;;  %v3475_v15 = vadd.f32 %v3443_v55, %v3411_v35  ;;  %vm3144_vm4 = vmand %vm3099_vm2, %vm3122_vm3 }
 0x276   : > { %v3250_v8 = vsel %vm5296_vm5, %v2870_v43, 0.0  ;;  %v2872_v19 = vpop.f32.mrb[123].mxu0  ;;  %v3476_v32 = vadd.f32 %v3444_v58, %v3412_v45 }
 0x277   : > { %v3490_v16 = vadd.f32 %v3474_v42, %v3250_v8  ;;  %v3251_v18 = vsel %vm5308_vm8, %v2872_v19, 0.0 }
 0x278   : > { %v3491_v20 = vadd.f32 %v3475_v15, %v3251_v18 }
 0x279   : > { %v3512_v21 = vadd.f32 %v5158_v24, %v3490_v16  ;;  %v2941_v54 = vpop.f32.mrb[124].mxu1 }
 0x27a   : > { %v3513_v13 = vadd.f32 %v5158_v24, %v3491_v20  ;;  %v2942_v22 = vpop.f32.mrb[125].mxu1 }
 0x27c   : > { %v3539_v14 = vcombine.low %v3512_v21, %v3513_v13 }
 0x27d   : > { %v2945_v28 = vpop.f32.mrb[126].mxu1 }
 0x27e   : > { %3555 = vst [vmem:[%s5175_s16 + $0x28] sm:$0xff] %v3539_v14  ;;  %v3222_v30 = vsel %vm5328_vm11, %v2945_v28, 0.0  ;;  %v2947_v31 = vpop.f32.mrb[127].mxu1 }
 0x27f   : > { %v3367_v48 = vrot.slane %v3222_v30, 4 }
 0x281   : > { %v3399_v35 = vadd.f32 %v3367_v48, %v3335_v4  ;;  %v2950_v59 = vpop.f32.mrb[128].mxu1 }
 0x282   : > { %v3237_v7 = vsel %vm5328_vm11, %v2950_v59, 0.0  ;;  %v2952_v26 = vpop.f32.mrb[129].mxu1 }
 0x283   : > { %v3414_v38 = vadd.f32 %v3398_v2, %v3237_v7  ;;  %v3445_v39 = vrot.slane %v3237_v7, 4  ;;  %v3238_v42 = vsel %vm5337_vm14, %v2952_v26, 0.0 }
 0x284   : > { %v3415_v46 = vadd.f32 %v3399_v35, %v3238_v42  ;;  %v3446_v47 = vrot.slane %v3238_v42, 4 }
 0x285   : > { %v2956_v49 = vpop.f32.mrb[130].mxu1  ;;  %v3477_v52 = vadd.f32 %v3445_v39, %v3413_v60 }
 0x286   : > { %v3252_v33 = vsel %vm5328_vm11, %v2956_v49, 0.0  ;;  %v2958_v37 = vpop.f32.mrb[131].mxu1  ;;  %v3478_v53 = vadd.f32 %v3446_v47, %v3414_v38 }
 0x287   : > { %v3492_v50 = vadd.f32 %v3476_v32, %v3252_v33  ;;  %v3253_v1 = vsel %vm5337_vm14, %v2958_v37, 0.0 }
 0x288   : > { %v3493_v17 = vadd.f32 %v3477_v52, %v3253_v1 }
 0x289   : > { %v3514_v44 = vadd.f32 %v5158_v24, %v3492_v50  ;;  %v3027_v41 = vpop.f32.mrb[124].mxu0 }
 0x28a   : > { %v3515_v40 = vadd.f32 %v5158_v24, %v3493_v17  ;;  %v3028_v57 = vpop.f32.mrb[125].mxu0 }
 0x28c   : > { %v3540_v61 = vcombine.low %v3514_v44, %v3515_v40 }
 0x28d   : > { %v3031_v51 = vpop.f32.mrb[126].mxu0 }
 0x28e   : > { %3556 = vst [vmem:[%s5175_s16 + $0x30] sm:$0xff] %v3540_v61  ;;  %v3032_v12 = vpop.f32.mrb[127].mxu0 }
 0x291   : > { %v3035_v36 = vpop.f32.mrb[128].mxu0 }
 0x292   : > { %v3239_v4 = vsel %vm3143_vm1, %v3035_v36, 0.0  ;;  %v3037_v5 = vpop.f32.mrb[129].mxu0 }
 0x293   : > { %v3447_v6 = vrot.slane %v3239_v4, 4 }
 0x295   : > { %v3479_v9 = vadd.f32 %v3447_v6, %v3415_v46  ;;  %v3040_v27 = vpop.f32.mrb[130].mxu0 }
 0x296   : > { %v3254_v23 = vsel %vm3143_vm1, %v3040_v27, 0.0  ;;  %v3042_v2 = vpop.f32.mrb[131].mxu0 }
 0x297   : > { %v3494_v45 = vadd.f32 %v3478_v53, %v3254_v23  ;;  %v3255_v55 = vsel %vm3144_vm4, %v3042_v2, 0.0 }
 0x298   : > { %v3495_v56 = vadd.f32 %v3479_v9, %v3255_v55 }
 0x299   : > { %v3516_v10 = vadd.f32 %v5158_v24, %v3494_v45 }
 0x29a   : > { %v3517_v60 = vadd.f32 %v5158_v24, %v3495_v56 }
 0x29c   : > { %v3541_v58 = vcombine.low %v3516_v10, %v3517_v60 }
 0x29e   : > { %3557 = vst [vmem:[%s5175_s16 + $0x38] sm:$0xff] %v3541_v58 }
 0x29f PF: > { %s15_s22 = sadd.s32 1, %s4133_s22   ;;  %s5416_s18 = smov %s4125_s20 }
 0x2a0   : > { %p12_p9 = scmp.ge.s32.totalorder %s15_s22, 6   ;;  %s5417_s19 = smov %s4129_s21 }
 0x2a1   : > { %s5418_s20 = smov %s5421_s23  ;;  %s5419_s21 = smov %s5425_s24 }
 0x2a2   :  { %14 = sbr.rel (!%p12_p9) target bundleno = 3 (0x3), region = 70 }

</bundles_post_ra>
